<compile_context>
chip_gen: v5e
topology: v5e:2x2
jax: 0.10.0
libtpu: 0.0.40
codegen_flags: <defaults>
</compile_context>

<pallas_src>
import math
import functools

import jax
import jax.numpy as jnp
from jax.experimental import pallas as pl
from jax.experimental.pallas import tpu as pltpu

# ---------------- synthetic "base_model_config" (BERT-style) -----------------
VOCAB = 100
VOCAB_PAD = 128      # lane-dense contraction width for the one-hot gather
MAX_POS = 16
HIDDEN = 32          # base_model_config.hidden_size
N_HEADS = 4
FFN = 64
N_LAYERS = 2
LN_EPS = 1e-12

LANE_W = 3 * HIDDEN                       # 96: packed lane width of the layer slabs
W_ROWS = HIDDEN + HIDDEN + HIDDEN + FFN   # 160 rows/layer: wqkv | wo | w1 | w2


# ------------------------------ Pallas kernel --------------------------------
def fused_encoder_kernel(ids_ref, mask_ref, tok_ref, embv_ref, wslab_ref, vslab_ref,
                         cls_ref, *, batch, seq, n_heads, n_layers, eps):
    B, S = batch, seq
    H, F = HIDDEN, FFN
    dh = H // n_heads
    f32, bf16 = jnp.float32, jnp.bfloat16

    def layernorm(v, g, b):
        # one-pass stats: mean and mean-of-squares reduce independently (no serial dep)
        mu = jnp.mean(v, axis=-1, keepdims=True)
        ms = jnp.mean(v * v, axis=-1, keepdims=True)
        var = ms - mu * mu
        return (v - mu) * jax.lax.rsqrt(var + eps) * g + b

    # ---- embeddings: token gather as a lane-dense one-hot matmul (K = 128) ----
    ids = ids_ref[...]                                                  # (B*S, 1) int32
    iota_v = jax.lax.broadcasted_iota(jnp.int32, (B * S, VOCAB_PAD), 1)
    onehot = (iota_v == ids).astype(bf16)                               # (B*S, 128)
    tok = jnp.dot(onehot, tok_ref[...], preferred_element_type=f32)     # (B*S, H) f32
    pos = embv_ref[0:S, :]                                              # (S, H)
    g_e = embv_ref[MAX_POS:MAX_POS + 1, :]
    b_e = embv_ref[MAX_POS + 1:MAX_POS + 2, :]
    x = (tok.reshape(B, S, H) + pos[None, :, :]).reshape(B * S, H)
    x = layernorm(x, g_e, b_e)                                          # (B*S, H) f32

    # additive attention bias (1 keep, 0 pad) -> (B, 1, S), broadcast over query rows
    neg = (1.0 - mask_ref[...]) * (-1e9)

    # ---- transformer layers (static unroll; all weights resident in VMEM) ----
    for l in range(n_layers):
        wsl = wslab_ref[l]                                              # (160, 96) bf16
        wqkv = wsl[0:H, :]                                              # (H, 3H)
        wo = wsl[H:2 * H, 0:H]                                          # (H, H)
        w1 = wsl[2 * H:3 * H, 0:F]                                      # (H, F)
        w2 = wsl[3 * H:3 * H + F, 0:H]                                  # (F, H)
        vsl = vslab_ref[l]                                              # (8, 96) f32
        bqkv = vsl[0:1, :]
        bo, ln1g, ln1b = vsl[1:2, 0:H], vsl[2:3, 0:H], vsl[3:4, 0:H]
        b1 = vsl[4:5, 0:F]
        b2, ln2g, ln2b = vsl[5:6, 0:H], vsl[6:7, 0:H], vsl[7:8, 0:H]

        last = (l == n_layers - 1)

        # QKV in one MXU push (1/sqrt(dh) already folded into the Q columns at init)
        qkv = jnp.dot(x.astype(bf16), wqkv, preferred_element_type=f32) + bqkv  # (B*S, 3H)
        qkv3 = qkv.reshape(B, S, 3 * H)

        # Per-head attention with the output projection folded per head:
        # attn_out = sum_h (softmax(q_h k_h^T + bias) v_h) @ wo[h*dh:(h+1)*dh, :]
        # -> no lane-axis concat of head contexts.
        rows = B if last else B * S
        attn_out = jnp.zeros((rows, H), f32)
        for h in range(n_heads):
            q_h = qkv3[:, :, h * dh:(h + 1) * dh].astype(bf16)              # (B, S, dh)
            k_h = qkv3[:, :, H + h * dh:H + (h + 1) * dh].astype(bf16)
            v_h = qkv3[:, :, 2 * H + h * dh:2 * H + (h + 1) * dh].astype(bf16)
            s = jnp.einsum('bqd,bkd->bqk', q_h, k_h,
                           preferred_element_type=f32)                       # (B, S, S)
            s = s + neg
            s = s - jnp.max(s, axis=-1, keepdims=True)
            p = jnp.exp(s)
            p = p * pl.reciprocal(jnp.sum(p, axis=-1, keepdims=True), approx=True)
            ctx_h = jnp.einsum('bqk,bkd->bqd', p.astype(bf16), v_h,
                               preferred_element_type=f32)                   # (B, S, dh)
            if last:
                # only the CLS token is consumed downstream: sublane row-0 extraction
                ctx_rows = ctx_h[:, 0:1, :].reshape(B, dh)                   # (B, dh)
            else:
                ctx_rows = ctx_h.reshape(B * S, dh)
            wo_h = wo[h * dh:(h + 1) * dh, :]                                # (dh, H)
            attn_out = attn_out + jnp.dot(ctx_rows.astype(bf16), wo_h,
                                          preferred_element_type=f32)

        # residual path: CLS rows only for the last layer (sublane extraction, no matmul)
        res = x.reshape(B, S, H)[:, 0:1, :].reshape(B, H) if last else x
        x = layernorm(res + attn_out + bo, ln1g, ln1b)

        # tanh GELU -> EUP slot (tiny numerical deviation from exact-erf nn.GELU)
        h1 = jax.nn.gelu(jnp.dot(x.astype(bf16), w1, preferred_element_type=f32) + b1,
                         approximate=True)
        ffn_out = jnp.dot(h1.astype(bf16), w2, preferred_element_type=f32) + b2
        x = layernorm(x + ffn_out, ln2g, ln2b)

    cls_ref[...] = x.astype(cls_ref.dtype)                                   # (B, H)


# ------------------------------ wrapper ---------------------------------------
def finetune_model_forward(params, input_ids, attention_mask):
    """Matches FinetuneModel.forward: returns cls_token of shape (B, hidden_size)."""
    B, S = input_ids.shape
    ids_col = input_ids.reshape(B * S, 1).astype(jnp.int32)
    mask3 = attention_mask.reshape(B, 1, S).astype(jnp.float32)

    inputs = (ids_col, mask3, params["tok_emb"], params["emb_vecs"],
              params["wslab"], params["vslab"])

    def full_spec(a):
        nd = a.ndim
        return pl.BlockSpec(a.shape, lambda i, _nd=nd: (0,) * _nd)

    kernel = functools.partial(fused_encoder_kernel, batch=B, seq=S,
                               n_heads=N_HEADS, n_layers=N_LAYERS, eps=LN_EPS)

    cls_token = pl.pallas_call(
        kernel,
        out_shape=jax.ShapeDtypeStruct((B, HIDDEN), jnp.float32),
        grid=(1,),
        in_specs=[full_spec(a) for a in inputs],
        out_specs=pl.BlockSpec((B, HIDDEN), lambda i: (0, 0)),
        compiler_params=pltpu.CompilerParams(dimension_semantics=("arbitrary",)),
    )(*inputs)
    # nn.Dropout is identity at inference; .view(-1, H) already satisfied: (B, H).
    return cls_token


# ------------------------------ parameter init --------------------------------
def init_params(key):
    kemb, *klayers = jax.random.split(key, 1 + N_LAYERS)

    def normal(k, shape):
        return jax.random.normal(k, shape, jnp.float32) * 0.02

    ke1, ke2 = jax.random.split(kemb)
    tok_emb = normal(ke1, (VOCAB, HIDDEN))
    tok_emb_pad = jnp.zeros((VOCAB_PAD, HIDDEN), jnp.float32).at[:VOCAB].set(tok_emb)
    pos_emb = normal(ke2, (MAX_POS, HIDDEN))
    emb_vecs = jnp.concatenate(
        [pos_emb,
         jnp.ones((1, HIDDEN), jnp.float32),      # embedding-LN gamma
         jnp.zeros((1, HIDDEN), jnp.float32)],    # embedding-LN beta
        axis=0)                                   # (MAX_POS + 2, H) f32

    scale = 1.0 / math.sqrt(HIDDEN // N_HEADS)

    def pad_lanes(w, width=LANE_W):
        return jnp.pad(w, ((0, 0), (0, width - w.shape[1])))

    def pad_row(v, width=LANE_W):
        return jnp.pad(v, (0, width - v.shape[0]))

    wslab_l, vslab_l = [], []
    for kl in klayers:
        ks = jax.random.split(kl, 6)
        wq = normal(ks[0], (HIDDEN, HIDDEN)) * scale      # fold attention scale into Q
        wk = normal(ks[1], (HIDDEN, HIDDEN))
        wv = normal(ks[2], (HIDDEN, HIDDEN))
        wqkv = jnp.concatenate([wq, wk, wv], axis=1)      # (H, 3H)
        wo = normal(ks[3], (HIDDEN, HIDDEN))
        w1 = normal(ks[4], (HIDDEN, FFN))
        w2 = normal(ks[5], (FFN, HIDDEN))
        wslab_l.append(jnp.concatenate(
            [wqkv, pad_lanes(wo), pad_lanes(w1), pad_lanes(w2)], axis=0))  # (160, 96)

        bqkv = jnp.zeros((3 * HIDDEN,), jnp.float32)
        bqkv = bqkv.at[:HIDDEN].multiply(scale)           # scale fold (zeros -> no-op)
        vslab_l.append(jnp.stack([
            bqkv,                                         # row 0: bqkv (3H)
            pad_row(jnp.zeros((HIDDEN,), jnp.float32)),   # row 1: bo
            pad_row(jnp.ones((HIDDEN,), jnp.float32)),    # row 2: ln1 gamma
            pad_row(jnp.zeros((HIDDEN,), jnp.float32)),   # row 3: ln1 beta
            pad_row(jnp.zeros((FFN,), jnp.float32)),      # row 4: b1
            pad_row(jnp.zeros((HIDDEN,), jnp.float32)),   # row 5: b2
            pad_row(jnp.ones((HIDDEN,), jnp.float32)),    # row 6: ln2 gamma
            pad_row(jnp.zeros((HIDDEN,), jnp.float32)),   # row 7: ln2 beta
        ]))                                               # (8, 96)

    return {
        "tok_emb": tok_emb_pad.astype(jnp.bfloat16),      # (128, H) bf16 MXU operand
        "emb_vecs": emb_vecs,                             # (MAX_POS+2, H) f32
        "wslab": jnp.stack(wslab_l).astype(jnp.bfloat16), # (L, 160, 96) bf16 MXU operands
        "vslab": jnp.stack(vslab_l),                      # (L, 8, 96) f32 (VPU math)
    }


# ----------------------------------- main --------------------------------------
if __name__ == "__main__":
    key = jax.random.PRNGKey(0)
    kp, kid = jax.random.split(key)

    B, S = 2, 8
    params = init_params(kp)
    input_ids = jax.random.randint(kid, (B, S), 0, VOCAB, dtype=jnp.int32)
    attention_mask = jnp.array([[1, 1, 1, 1, 1, 1, 1, 1],
                                [1, 1, 1, 1, 1, 0, 0, 0]], dtype=jnp.int32)

    cls_token = jax.jit(finetune_model_forward)(params, input_ids, attention_mask)
    cls_token = jax.block_until_ready(cls_token)
    assert cls_token.shape == (B, HIDDEN) and cls_token.dtype == jnp.float32
    print("KERNEL_OK")
</pallas_src>

<mosaic_0001>
module attributes {stable_mosaic.version = 11 : i64} {
  func.func @fused_encoder_kernel(%arg0: i32, %arg1: memref<16x1xi32, #tpu.memory_space<vmem>>, %arg2: memref<2x1x8xf32, #tpu.memory_space<vmem>>, %arg3: memref<128x32xbf16, #tpu.memory_space<vmem>>, %arg4: memref<18x32xf32, #tpu.memory_space<vmem>>, %arg5: memref<2x160x96xbf16, #tpu.memory_space<vmem>>, %arg6: memref<2x8x96xf32, #tpu.memory_space<vmem>>, %arg7: memref<2x32xf32, #tpu.memory_space<vmem>>) attributes {dimension_semantics = [#tpu.dimension_semantics<arbitrary>], iteration_bounds = array<i64: 1>, scalar_prefetch = 0 : i64, scratch_operands = 0 : i64, tpu.core_type = #tpu.core_type<tc>, window_params = [{pipeline_mode = #tpu.pipeline_mode<synchronous>, transform_indices = @transform_0, window_bounds = array<i64: 16, 1>}, {pipeline_mode = #tpu.pipeline_mode<synchronous>, transform_indices = @transform_1, window_bounds = array<i64: 2, 1, 8>}, {pipeline_mode = #tpu.pipeline_mode<synchronous>, transform_indices = @transform_2, window_bounds = array<i64: 128, 32>}, {pipeline_mode = #tpu.pipeline_mode<synchronous>, transform_indices = @transform_3, window_bounds = array<i64: 18, 32>}, {pipeline_mode = #tpu.pipeline_mode<synchronous>, transform_indices = @transform_4, window_bounds = array<i64: 2, 160, 96>}, {pipeline_mode = #tpu.pipeline_mode<synchronous>, transform_indices = @transform_5, window_bounds = array<i64: 2, 8, 96>}, {pipeline_mode = #tpu.pipeline_mode<synchronous>, transform_indices = @transform_6, window_bounds = array<i64: 2, 32>}]} {
    %c0 = arith.constant 0 : index
    %c0_0 = arith.constant 0 : index
    %0 = vector.load %arg1[%c0, %c0_0] : memref<16x1xi32, #tpu.memory_space<vmem>>, vector<16x1xi32>
    %1 = tpu.iota {dimensions = array<i32: 1>} : vector<16x128xi32>
    %2 = vector.broadcast %0 : vector<16x1xi32> to vector<16x128xi32>
    %3 = arith.cmpi eq, %1, %2 : vector<16x128xi32>
    %4 = arith.extui %3 : vector<16x128xi1> to vector<16x128xi32>
    %5 = arith.sitofp %4 : vector<16x128xi32> to vector<16x128xf32>
    %6 = arith.truncf %5 : vector<16x128xf32> to vector<16x128xbf16>
    %c0_1 = arith.constant 0 : index
    %c0_2 = arith.constant 0 : index
    %7 = vector.load %arg3[%c0_1, %c0_2] : memref<128x32xbf16, #tpu.memory_space<vmem>>, vector<128x32xbf16>
    %cst = arith.constant dense<0.000000e+00> : vector<16x32xf32>
    %8 = tpu.matmul %6, %7, %cst {dimension_numbers = #tpu.dot_dimension_numbers<[1], [0], [0], [1], [0, 0, 1, 1], [], []>} : vector<16x128xbf16>, vector<128x32xbf16>, vector<16x32xf32> -> vector<16x32xf32>
    %c0_3 = arith.constant 0 : index
    %c0_4 = arith.constant 0 : index
    %9 = vector.load %arg4[%c0_3, %c0_4] : memref<18x32xf32, #tpu.memory_space<vmem>>, vector<8x32xf32>
    %c16 = arith.constant 16 : index
    %c0_5 = arith.constant 0 : index
    %10 = vector.load %arg4[%c16, %c0_5] : memref<18x32xf32, #tpu.memory_space<vmem>>, vector<1x32xf32>
    %c17 = arith.constant 17 : index
    %c0_6 = arith.constant 0 : index
    %11 = vector.load %arg4[%c17, %c0_6] : memref<18x32xf32, #tpu.memory_space<vmem>>, vector<1x32xf32>
    %12 = vector.shape_cast %8 : vector<16x32xf32> to vector<2x8x32xf32>
    %13 = vector.shape_cast %9 : vector<8x32xf32> to vector<1x8x32xf32>
    %14 = vector.broadcast %13 : vector<1x8x32xf32> to vector<2x8x32xf32>
    %15 = arith.addf %12, %14 : vector<2x8x32xf32>
    %16 = vector.shape_cast %15 : vector<2x8x32xf32> to vector<16x32xf32>
    %cst_7 = arith.constant dense<0.000000e+00> : vector<16xf32>
    %17 = vector.multi_reduction <add>, %16, %cst_7 [1] : vector<16x32xf32> to vector<16xf32>
    %18 = vector.shape_cast %17 : vector<16xf32> to vector<16x1xf32>
    %cst_8 = arith.constant 3.200000e+01 : f32
    %19 = vector.broadcast %cst_8 : f32 to vector<16x1xf32>
    %20 = arith.divf %18, %19 : vector<16x1xf32>
    %21 = arith.mulf %16, %16 : vector<16x32xf32>
    %cst_9 = arith.constant dense<0.000000e+00> : vector<16xf32>
    %22 = vector.multi_reduction <add>, %21, %cst_9 [1] : vector<16x32xf32> to vector<16xf32>
    %23 = vector.shape_cast %22 : vector<16xf32> to vector<16x1xf32>
    %cst_10 = arith.constant 3.200000e+01 : f32
    %24 = vector.broadcast %cst_10 : f32 to vector<16x1xf32>
    %25 = arith.divf %23, %24 : vector<16x1xf32>
    %26 = arith.mulf %20, %20 : vector<16x1xf32>
    %27 = arith.subf %25, %26 : vector<16x1xf32>
    %28 = vector.broadcast %20 : vector<16x1xf32> to vector<16x32xf32>
    %29 = arith.subf %16, %28 : vector<16x32xf32>
    %cst_11 = arith.constant 9.99999996E-13 : f32
    %30 = vector.broadcast %cst_11 : f32 to vector<16x1xf32>
    %31 = arith.addf %27, %30 : vector<16x1xf32>
    %32 = math.rsqrt %31 : vector<16x1xf32>
    %33 = vector.broadcast %32 : vector<16x1xf32> to vector<16x32xf32>
    %34 = arith.mulf %29, %33 : vector<16x32xf32>
    %35 = vector.broadcast %10 : vector<1x32xf32> to vector<16x32xf32>
    %36 = arith.mulf %34, %35 : vector<16x32xf32>
    %37 = vector.broadcast %11 : vector<1x32xf32> to vector<16x32xf32>
    %38 = arith.addf %36, %37 : vector<16x32xf32>
    %c0_12 = arith.constant 0 : index
    %c0_13 = arith.constant 0 : index
    %c0_14 = arith.constant 0 : index
    %39 = vector.load %arg2[%c0_12, %c0_13, %c0_14] : memref<2x1x8xf32, #tpu.memory_space<vmem>>, vector<2x1x8xf32>
    %cst_15 = arith.constant 1.000000e+00 : f32
    %40 = vector.broadcast %cst_15 : f32 to vector<2x1x8xf32>
    %41 = arith.subf %40, %39 : vector<2x1x8xf32>
    %cst_16 = arith.constant -1.000000e+09 : f32
    %42 = vector.broadcast %cst_16 : f32 to vector<2x1x8xf32>
    %43 = arith.mulf %41, %42 : vector<2x1x8xf32>
    %c0_17 = arith.constant 0 : index
    %c0_18 = arith.constant 0 : index
    %c0_19 = arith.constant 0 : index
    %44 = vector.load %arg5[%c0_17, %c0_18, %c0_19] : memref<2x160x96xbf16, #tpu.memory_space<vmem>>, vector<1x160x96xbf16>
    %45 = vector.shape_cast %44 : vector<1x160x96xbf16> to vector<160x96xbf16>
    %46 = vector.extract_strided_slice %45 {offsets = [0, 0], sizes = [32, 96], strides = [1, 1]} : vector<160x96xbf16> to vector<32x96xbf16>
    %47 = vector.extract_strided_slice %45 {offsets = [32, 0], sizes = [32, 32], strides = [1, 1]} : vector<160x96xbf16> to vector<32x32xbf16>
    %48 = vector.extract_strided_slice %45 {offsets = [64, 0], sizes = [32, 64], strides = [1, 1]} : vector<160x96xbf16> to vector<32x64xbf16>
    %49 = vector.extract_strided_slice %45 {offsets = [96, 0], sizes = [64, 32], strides = [1, 1]} : vector<160x96xbf16> to vector<64x32xbf16>
    %c0_20 = arith.constant 0 : index
    %c0_21 = arith.constant 0 : index
    %c0_22 = arith.constant 0 : index
    %50 = vector.load %arg6[%c0_20, %c0_21, %c0_22] : memref<2x8x96xf32, #tpu.memory_space<vmem>>, vector<1x8x96xf32>
    %51 = vector.shape_cast %50 : vector<1x8x96xf32> to vector<8x96xf32>
    %52 = vector.extract_strided_slice %51 {offsets = [0, 0], sizes = [1, 96], strides = [1, 1]} : vector<8x96xf32> to vector<1x96xf32>
    %53 = vector.extract_strided_slice %51 {offsets = [1, 0], sizes = [1, 32], strides = [1, 1]} : vector<8x96xf32> to vector<1x32xf32>
    %54 = vector.extract_strided_slice %51 {offsets = [2, 0], sizes = [1, 32], strides = [1, 1]} : vector<8x96xf32> to vector<1x32xf32>
    %55 = vector.extract_strided_slice %51 {offsets = [3, 0], sizes = [1, 32], strides = [1, 1]} : vector<8x96xf32> to vector<1x32xf32>
    %56 = vector.extract_strided_slice %51 {offsets = [4, 0], sizes = [1, 64], strides = [1, 1]} : vector<8x96xf32> to vector<1x64xf32>
    %57 = vector.extract_strided_slice %51 {offsets = [5, 0], sizes = [1, 32], strides = [1, 1]} : vector<8x96xf32> to vector<1x32xf32>
    %58 = vector.extract_strided_slice %51 {offsets = [6, 0], sizes = [1, 32], strides = [1, 1]} : vector<8x96xf32> to vector<1x32xf32>
    %59 = vector.extract_strided_slice %51 {offsets = [7, 0], sizes = [1, 32], strides = [1, 1]} : vector<8x96xf32> to vector<1x32xf32>
    %60 = arith.truncf %38 : vector<16x32xf32> to vector<16x32xbf16>
    %cst_23 = arith.constant dense<0.000000e+00> : vector<16x96xf32>
    %61 = tpu.matmul %60, %46, %cst_23 {dimension_numbers = #tpu.dot_dimension_numbers<[1], [0], [0], [1], [0, 0, 1, 1], [], []>} : vector<16x32xbf16>, vector<32x96xbf16>, vector<16x96xf32> -> vector<16x96xf32>
    %62 = vector.broadcast %52 : vector<1x96xf32> to vector<16x96xf32>
    %63 = arith.addf %61, %62 : vector<16x96xf32>
    %64 = vector.shape_cast %63 : vector<16x96xf32> to vector<2x8x96xf32>
    %cst_24 = arith.constant 0.000000e+00 : f32
    %65 = vector.broadcast %cst_24 : f32 to vector<16x32xf32>
    %66 = vector.extract_strided_slice %64 {offsets = [0, 0, 0], sizes = [2, 8, 8], strides = [1, 1, 1]} : vector<2x8x96xf32> to vector<2x8x8xf32>
    %67 = arith.truncf %66 : vector<2x8x8xf32> to vector<2x8x8xbf16>
    %68 = vector.extract_strided_slice %64 {offsets = [0, 0, 32], sizes = [2, 8, 8], strides = [1, 1, 1]} : vector<2x8x96xf32> to vector<2x8x8xf32>
    %69 = arith.truncf %68 : vector<2x8x8xf32> to vector<2x8x8xbf16>
    %70 = vector.extract_strided_slice %64 {offsets = [0, 0, 64], sizes = [2, 8, 8], strides = [1, 1, 1]} : vector<2x8x96xf32> to vector<2x8x8xf32>
    %71 = arith.truncf %70 : vector<2x8x8xf32> to vector<2x8x8xbf16>
    "tpu.trace_start"() <{level = 10 : i32, message = "bqd,bkd->bqk"}> : () -> ()
    %cst_25 = arith.constant dense<0.000000e+00> : vector<2x8x8xf32>
    %72 = tpu.matmul %67, %69, %cst_25 {dimension_numbers = #tpu.dot_dimension_numbers<[2], [2], [1], [1], [0, 0, 0, 1, 1, 1], [0], [0]>} : vector<2x8x8xbf16>, vector<2x8x8xbf16>, vector<2x8x8xf32> -> vector<2x8x8xf32>
    "tpu.trace_stop"() : () -> ()
    %73 = vector.broadcast %43 : vector<2x1x8xf32> to vector<2x8x8xf32>
    %74 = arith.addf %72, %73 : vector<2x8x8xf32>
    %cst_26 = arith.constant dense<0xFF800000> : vector<2x8xf32>
    %75 = vector.multi_reduction <maximumf>, %74, %cst_26 [2] : vector<2x8x8xf32> to vector<2x8xf32>
    %76 = vector.shape_cast %75 : vector<2x8xf32> to vector<2x8x1xf32>
    %77 = vector.broadcast %76 : vector<2x8x1xf32> to vector<2x8x8xf32>
    %78 = arith.subf %74, %77 : vector<2x8x8xf32>
    %79 = math.exp %78 : vector<2x8x8xf32>
    %cst_27 = arith.constant dense<0.000000e+00> : vector<2x8xf32>
    %80 = vector.multi_reduction <add>, %79, %cst_27 [2] : vector<2x8x8xf32> to vector<2x8xf32>
    %81 = vector.shape_cast %80 : vector<2x8xf32> to vector<2x8x1xf32>
    %82 = tpu.reciprocal %81 {approx = true} : vector<2x8x1xf32> -> vector<2x8x1xf32>
    %83 = vector.broadcast %82 : vector<2x8x1xf32> to vector<2x8x8xf32>
    %84 = arith.mulf %79, %83 : vector<2x8x8xf32>
    %85 = arith.truncf %84 : vector<2x8x8xf32> to vector<2x8x8xbf16>
    "tpu.trace_start"() <{level = 10 : i32, message = "bqk,bkd->bqd"}> : () -> ()
    %cst_28 = arith.constant dense<0.000000e+00> : vector<2x8x8xf32>
    %86 = tpu.matmul %85, %71, %cst_28 {dimension_numbers = #tpu.dot_dimension_numbers<[2], [1], [1], [2], [0, 0, 0, 1, 1, 2], [0], [0]>} : vector<2x8x8xbf16>, vector<2x8x8xbf16>, vector<2x8x8xf32> -> vector<2x8x8xf32>
    "tpu.trace_stop"() : () -> ()
    %87 = vector.shape_cast %86 : vector<2x8x8xf32> to vector<16x8xf32>
    %88 = vector.extract_strided_slice %47 {offsets = [0, 0], sizes = [8, 32], strides = [1, 1]} : vector<32x32xbf16> to vector<8x32xbf16>
    %89 = arith.truncf %87 : vector<16x8xf32> to vector<16x8xbf16>
    %cst_29 = arith.constant dense<0.000000e+00> : vector<16x32xf32>
    %90 = tpu.matmul %89, %88, %cst_29 {dimension_numbers = #tpu.dot_dimension_numbers<[1], [0], [0], [1], [0, 0, 1, 1], [], []>} : vector<16x8xbf16>, vector<8x32xbf16>, vector<16x32xf32> -> vector<16x32xf32>
    %91 = arith.addf %65, %90 : vector<16x32xf32>
    %92 = vector.extract_strided_slice %64 {offsets = [0, 0, 8], sizes = [2, 8, 8], strides = [1, 1, 1]} : vector<2x8x96xf32> to vector<2x8x8xf32>
    %93 = arith.truncf %92 : vector<2x8x8xf32> to vector<2x8x8xbf16>
    %94 = vector.extract_strided_slice %64 {offsets = [0, 0, 40], sizes = [2, 8, 8], strides = [1, 1, 1]} : vector<2x8x96xf32> to vector<2x8x8xf32>
    %95 = arith.truncf %94 : vector<2x8x8xf32> to vector<2x8x8xbf16>
    %96 = vector.extract_strided_slice %64 {offsets = [0, 0, 72], sizes = [2, 8, 8], strides = [1, 1, 1]} : vector<2x8x96xf32> to vector<2x8x8xf32>
    %97 = arith.truncf %96 : vector<2x8x8xf32> to vector<2x8x8xbf16>
    "tpu.trace_start"() <{level = 10 : i32, message = "bqd,bkd->bqk"}> : () -> ()
    %cst_30 = arith.constant dense<0.000000e+00> : vector<2x8x8xf32>
    %98 = tpu.matmul %93, %95, %cst_30 {dimension_numbers = #tpu.dot_dimension_numbers<[2], [2], [1], [1], [0, 0, 0, 1, 1, 1], [0], [0]>} : vector<2x8x8xbf16>, vector<2x8x8xbf16>, vector<2x8x8xf32> -> vector<2x8x8xf32>
    "tpu.trace_stop"() : () -> ()
    %99 = vector.broadcast %43 : vector<2x1x8xf32> to vector<2x8x8xf32>
    %100 = arith.addf %98, %99 : vector<2x8x8xf32>
    %cst_31 = arith.constant dense<0xFF800000> : vector<2x8xf32>
    %101 = vector.multi_reduction <maximumf>, %100, %cst_31 [2] : vector<2x8x8xf32> to vector<2x8xf32>
    %102 = vector.shape_cast %101 : vector<2x8xf32> to vector<2x8x1xf32>
    %103 = vector.broadcast %102 : vector<2x8x1xf32> to vector<2x8x8xf32>
    %104 = arith.subf %100, %103 : vector<2x8x8xf32>
    %105 = math.exp %104 : vector<2x8x8xf32>
    %cst_32 = arith.constant dense<0.000000e+00> : vector<2x8xf32>
    %106 = vector.multi_reduction <add>, %105, %cst_32 [2] : vector<2x8x8xf32> to vector<2x8xf32>
    %107 = vector.shape_cast %106 : vector<2x8xf32> to vector<2x8x1xf32>
    %108 = tpu.reciprocal %107 {approx = true} : vector<2x8x1xf32> -> vector<2x8x1xf32>
    %109 = vector.broadcast %108 : vector<2x8x1xf32> to vector<2x8x8xf32>
    %110 = arith.mulf %105, %109 : vector<2x8x8xf32>
    %111 = arith.truncf %110 : vector<2x8x8xf32> to vector<2x8x8xbf16>
    "tpu.trace_start"() <{level = 10 : i32, message = "bqk,bkd->bqd"}> : () -> ()
    %cst_33 = arith.constant dense<0.000000e+00> : vector<2x8x8xf32>
    %112 = tpu.matmul %111, %97, %cst_33 {dimension_numbers = #tpu.dot_dimension_numbers<[2], [1], [1], [2], [0, 0, 0, 1, 1, 2], [0], [0]>} : vector<2x8x8xbf16>, vector<2x8x8xbf16>, vector<2x8x8xf32> -> vector<2x8x8xf32>
    "tpu.trace_stop"() : () -> ()
    %113 = vector.shape_cast %112 : vector<2x8x8xf32> to vector<16x8xf32>
    %114 = vector.extract_strided_slice %47 {offsets = [8, 0], sizes = [8, 32], strides = [1, 1]} : vector<32x32xbf16> to vector<8x32xbf16>
    %115 = arith.truncf %113 : vector<16x8xf32> to vector<16x8xbf16>
    %cst_34 = arith.constant dense<0.000000e+00> : vector<16x32xf32>
    %116 = tpu.matmul %115, %114, %cst_34 {dimension_numbers = #tpu.dot_dimension_numbers<[1], [0], [0], [1], [0, 0, 1, 1], [], []>} : vector<16x8xbf16>, vector<8x32xbf16>, vector<16x32xf32> -> vector<16x32xf32>
    %117 = arith.addf %91, %116 : vector<16x32xf32>
    %118 = vector.extract_strided_slice %64 {offsets = [0, 0, 16], sizes = [2, 8, 8], strides = [1, 1, 1]} : vector<2x8x96xf32> to vector<2x8x8xf32>
    %119 = arith.truncf %118 : vector<2x8x8xf32> to vector<2x8x8xbf16>
    %120 = vector.extract_strided_slice %64 {offsets = [0, 0, 48], sizes = [2, 8, 8], strides = [1, 1, 1]} : vector<2x8x96xf32> to vector<2x8x8xf32>
    %121 = arith.truncf %120 : vector<2x8x8xf32> to vector<2x8x8xbf16>
    %122 = vector.extract_strided_slice %64 {offsets = [0, 0, 80], sizes = [2, 8, 8], strides = [1, 1, 1]} : vector<2x8x96xf32> to vector<2x8x8xf32>
    %123 = arith.truncf %122 : vector<2x8x8xf32> to vector<2x8x8xbf16>
    "tpu.trace_start"() <{level = 10 : i32, message = "bqd,bkd->bqk"}> : () -> ()
    %cst_35 = arith.constant dense<0.000000e+00> : vector<2x8x8xf32>
    %124 = tpu.matmul %119, %121, %cst_35 {dimension_numbers = #tpu.dot_dimension_numbers<[2], [2], [1], [1], [0, 0, 0, 1, 1, 1], [0], [0]>} : vector<2x8x8xbf16>, vector<2x8x8xbf16>, vector<2x8x8xf32> -> vector<2x8x8xf32>
    "tpu.trace_stop"() : () -> ()
    %125 = vector.broadcast %43 : vector<2x1x8xf32> to vector<2x8x8xf32>
    %126 = arith.addf %124, %125 : vector<2x8x8xf32>
    %cst_36 = arith.constant dense<0xFF800000> : vector<2x8xf32>
    %127 = vector.multi_reduction <maximumf>, %126, %cst_36 [2] : vector<2x8x8xf32> to vector<2x8xf32>
    %128 = vector.shape_cast %127 : vector<2x8xf32> to vector<2x8x1xf32>
    %129 = vector.broadcast %128 : vector<2x8x1xf32> to vector<2x8x8xf32>
    %130 = arith.subf %126, %129 : vector<2x8x8xf32>
    %131 = math.exp %130 : vector<2x8x8xf32>
    %cst_37 = arith.constant dense<0.000000e+00> : vector<2x8xf32>
    %132 = vector.multi_reduction <add>, %131, %cst_37 [2] : vector<2x8x8xf32> to vector<2x8xf32>
    %133 = vector.shape_cast %132 : vector<2x8xf32> to vector<2x8x1xf32>
    %134 = tpu.reciprocal %133 {approx = true} : vector<2x8x1xf32> -> vector<2x8x1xf32>
    %135 = vector.broadcast %134 : vector<2x8x1xf32> to vector<2x8x8xf32>
    %136 = arith.mulf %131, %135 : vector<2x8x8xf32>
    %137 = arith.truncf %136 : vector<2x8x8xf32> to vector<2x8x8xbf16>
    "tpu.trace_start"() <{level = 10 : i32, message = "bqk,bkd->bqd"}> : () -> ()
    %cst_38 = arith.constant dense<0.000000e+00> : vector<2x8x8xf32>
    %138 = tpu.matmul %137, %123, %cst_38 {dimension_numbers = #tpu.dot_dimension_numbers<[2], [1], [1], [2], [0, 0, 0, 1, 1, 2], [0], [0]>} : vector<2x8x8xbf16>, vector<2x8x8xbf16>, vector<2x8x8xf32> -> vector<2x8x8xf32>
    "tpu.trace_stop"() : () -> ()
    %139 = vector.shape_cast %138 : vector<2x8x8xf32> to vector<16x8xf32>
    %140 = vector.extract_strided_slice %47 {offsets = [16, 0], sizes = [8, 32], strides = [1, 1]} : vector<32x32xbf16> to vector<8x32xbf16>
    %141 = arith.truncf %139 : vector<16x8xf32> to vector<16x8xbf16>
    %cst_39 = arith.constant dense<0.000000e+00> : vector<16x32xf32>
    %142 = tpu.matmul %141, %140, %cst_39 {dimension_numbers = #tpu.dot_dimension_numbers<[1], [0], [0], [1], [0, 0, 1, 1], [], []>} : vector<16x8xbf16>, vector<8x32xbf16>, vector<16x32xf32> -> vector<16x32xf32>
    %143 = arith.addf %117, %142 : vector<16x32xf32>
    %144 = vector.extract_strided_slice %64 {offsets = [0, 0, 24], sizes = [2, 8, 8], strides = [1, 1, 1]} : vector<2x8x96xf32> to vector<2x8x8xf32>
    %145 = arith.truncf %144 : vector<2x8x8xf32> to vector<2x8x8xbf16>
    %146 = vector.extract_strided_slice %64 {offsets = [0, 0, 56], sizes = [2, 8, 8], strides = [1, 1, 1]} : vector<2x8x96xf32> to vector<2x8x8xf32>
    %147 = arith.truncf %146 : vector<2x8x8xf32> to vector<2x8x8xbf16>
    %148 = vector.extract_strided_slice %64 {offsets = [0, 0, 88], sizes = [2, 8, 8], strides = [1, 1, 1]} : vector<2x8x96xf32> to vector<2x8x8xf32>
    %149 = arith.truncf %148 : vector<2x8x8xf32> to vector<2x8x8xbf16>
    "tpu.trace_start"() <{level = 10 : i32, message = "bqd,bkd->bqk"}> : () -> ()
    %cst_40 = arith.constant dense<0.000000e+00> : vector<2x8x8xf32>
    %150 = tpu.matmul %145, %147, %cst_40 {dimension_numbers = #tpu.dot_dimension_numbers<[2], [2], [1], [1], [0, 0, 0, 1, 1, 1], [0], [0]>} : vector<2x8x8xbf16>, vector<2x8x8xbf16>, vector<2x8x8xf32> -> vector<2x8x8xf32>
    "tpu.trace_stop"() : () -> ()
    %151 = vector.broadcast %43 : vector<2x1x8xf32> to vector<2x8x8xf32>
    %152 = arith.addf %150, %151 : vector<2x8x8xf32>
    %cst_41 = arith.constant dense<0xFF800000> : vector<2x8xf32>
    %153 = vector.multi_reduction <maximumf>, %152, %cst_41 [2] : vector<2x8x8xf32> to vector<2x8xf32>
    %154 = vector.shape_cast %153 : vector<2x8xf32> to vector<2x8x1xf32>
    %155 = vector.broadcast %154 : vector<2x8x1xf32> to vector<2x8x8xf32>
    %156 = arith.subf %152, %155 : vector<2x8x8xf32>
    %157 = math.exp %156 : vector<2x8x8xf32>
    %cst_42 = arith.constant dense<0.000000e+00> : vector<2x8xf32>
    %158 = vector.multi_reduction <add>, %157, %cst_42 [2] : vector<2x8x8xf32> to vector<2x8xf32>
    %159 = vector.shape_cast %158 : vector<2x8xf32> to vector<2x8x1xf32>
    %160 = tpu.reciprocal %159 {approx = true} : vector<2x8x1xf32> -> vector<2x8x1xf32>
    %161 = vector.broadcast %160 : vector<2x8x1xf32> to vector<2x8x8xf32>
    %162 = arith.mulf %157, %161 : vector<2x8x8xf32>
    %163 = arith.truncf %162 : vector<2x8x8xf32> to vector<2x8x8xbf16>
    "tpu.trace_start"() <{level = 10 : i32, message = "bqk,bkd->bqd"}> : () -> ()
    %cst_43 = arith.constant dense<0.000000e+00> : vector<2x8x8xf32>
    %164 = tpu.matmul %163, %149, %cst_43 {dimension_numbers = #tpu.dot_dimension_numbers<[2], [1], [1], [2], [0, 0, 0, 1, 1, 2], [0], [0]>} : vector<2x8x8xbf16>, vector<2x8x8xbf16>, vector<2x8x8xf32> -> vector<2x8x8xf32>
    "tpu.trace_stop"() : () -> ()
    %165 = vector.shape_cast %164 : vector<2x8x8xf32> to vector<16x8xf32>
    %166 = vector.extract_strided_slice %47 {offsets = [24, 0], sizes = [8, 32], strides = [1, 1]} : vector<32x32xbf16> to vector<8x32xbf16>
    %167 = arith.truncf %165 : vector<16x8xf32> to vector<16x8xbf16>
    %cst_44 = arith.constant dense<0.000000e+00> : vector<16x32xf32>
    %168 = tpu.matmul %167, %166, %cst_44 {dimension_numbers = #tpu.dot_dimension_numbers<[1], [0], [0], [1], [0, 0, 1, 1], [], []>} : vector<16x8xbf16>, vector<8x32xbf16>, vector<16x32xf32> -> vector<16x32xf32>
    %169 = arith.addf %143, %168 : vector<16x32xf32>
    %170 = arith.addf %38, %169 : vector<16x32xf32>
    %171 = vector.broadcast %53 : vector<1x32xf32> to vector<16x32xf32>
    %172 = arith.addf %170, %171 : vector<16x32xf32>
    %cst_45 = arith.constant dense<0.000000e+00> : vector<16xf32>
    %173 = vector.multi_reduction <add>, %172, %cst_45 [1] : vector<16x32xf32> to vector<16xf32>
    %174 = vector.shape_cast %173 : vector<16xf32> to vector<16x1xf32>
    %cst_46 = arith.constant 3.200000e+01 : f32
    %175 = vector.broadcast %cst_46 : f32 to vector<16x1xf32>
    %176 = arith.divf %174, %175 : vector<16x1xf32>
    %177 = arith.mulf %172, %172 : vector<16x32xf32>
    %cst_47 = arith.constant dense<0.000000e+00> : vector<16xf32>
    %178 = vector.multi_reduction <add>, %177, %cst_47 [1] : vector<16x32xf32> to vector<16xf32>
    %179 = vector.shape_cast %178 : vector<16xf32> to vector<16x1xf32>
    %cst_48 = arith.constant 3.200000e+01 : f32
    %180 = vector.broadcast %cst_48 : f32 to vector<16x1xf32>
    %181 = arith.divf %179, %180 : vector<16x1xf32>
    %182 = arith.mulf %176, %176 : vector<16x1xf32>
    %183 = arith.subf %181, %182 : vector<16x1xf32>
    %184 = vector.broadcast %176 : vector<16x1xf32> to vector<16x32xf32>
    %185 = arith.subf %172, %184 : vector<16x32xf32>
    %cst_49 = arith.constant 9.99999996E-13 : f32
    %186 = vector.broadcast %cst_49 : f32 to vector<16x1xf32>
    %187 = arith.addf %183, %186 : vector<16x1xf32>
    %188 = math.rsqrt %187 : vector<16x1xf32>
    %189 = vector.broadcast %188 : vector<16x1xf32> to vector<16x32xf32>
    %190 = arith.mulf %185, %189 : vector<16x32xf32>
    %191 = vector.broadcast %54 : vector<1x32xf32> to vector<16x32xf32>
    %192 = arith.mulf %190, %191 : vector<16x32xf32>
    %193 = vector.broadcast %55 : vector<1x32xf32> to vector<16x32xf32>
    %194 = arith.addf %192, %193 : vector<16x32xf32>
    %195 = arith.truncf %194 : vector<16x32xf32> to vector<16x32xbf16>
    %cst_50 = arith.constant dense<0.000000e+00> : vector<16x64xf32>
    %196 = tpu.matmul %195, %48, %cst_50 {dimension_numbers = #tpu.dot_dimension_numbers<[1], [0], [0], [1], [0, 0, 1, 1], [], []>} : vector<16x32xbf16>, vector<32x64xbf16>, vector<16x64xf32> -> vector<16x64xf32>
    %197 = vector.broadcast %56 : vector<1x64xf32> to vector<16x64xf32>
    %198 = arith.addf %196, %197 : vector<16x64xf32>
    %199 = arith.mulf %198, %198 : vector<16x64xf32>
    %200 = arith.mulf %198, %199 : vector<16x64xf32>
    %cst_51 = arith.constant 4.471500e-02 : f32
    %201 = vector.broadcast %cst_51 : f32 to vector<16x64xf32>
    %202 = arith.mulf %201, %200 : vector<16x64xf32>
    %203 = arith.addf %198, %202 : vector<16x64xf32>
    %cst_52 = arith.constant 0.797884583 : f32
    %204 = vector.broadcast %cst_52 : f32 to vector<16x64xf32>
    %205 = arith.mulf %204, %203 : vector<16x64xf32>
    %206 = math.tanh %205 : vector<16x64xf32>
    %cst_53 = arith.constant 1.000000e+00 : f32
    %207 = vector.broadcast %cst_53 : f32 to vector<16x64xf32>
    %208 = arith.addf %207, %206 : vector<16x64xf32>
    %cst_54 = arith.constant 5.000000e-01 : f32
    %209 = vector.broadcast %cst_54 : f32 to vector<16x64xf32>
    %210 = arith.mulf %209, %208 : vector<16x64xf32>
    %211 = arith.mulf %198, %210 : vector<16x64xf32>
    %212 = arith.truncf %211 : vector<16x64xf32> to vector<16x64xbf16>
    %cst_55 = arith.constant dense<0.000000e+00> : vector<16x32xf32>
    %213 = tpu.matmul %212, %49, %cst_55 {dimension_numbers = #tpu.dot_dimension_numbers<[1], [0], [0], [1], [0, 0, 1, 1], [], []>} : vector<16x64xbf16>, vector<64x32xbf16>, vector<16x32xf32> -> vector<16x32xf32>
    %214 = vector.broadcast %57 : vector<1x32xf32> to vector<16x32xf32>
    %215 = arith.addf %213, %214 : vector<16x32xf32>
    %216 = arith.addf %194, %215 : vector<16x32xf32>
    %cst_56 = arith.constant dense<0.000000e+00> : vector<16xf32>
    %217 = vector.multi_reduction <add>, %216, %cst_56 [1] : vector<16x32xf32> to vector<16xf32>
    %218 = vector.shape_cast %217 : vector<16xf32> to vector<16x1xf32>
    %cst_57 = arith.constant 3.200000e+01 : f32
    %219 = vector.broadcast %cst_57 : f32 to vector<16x1xf32>
    %220 = arith.divf %218, %219 : vector<16x1xf32>
    %221 = arith.mulf %216, %216 : vector<16x32xf32>
    %cst_58 = arith.constant dense<0.000000e+00> : vector<16xf32>
    %222 = vector.multi_reduction <add>, %221, %cst_58 [1] : vector<16x32xf32> to vector<16xf32>
    %223 = vector.shape_cast %222 : vector<16xf32> to vector<16x1xf32>
    %cst_59 = arith.constant 3.200000e+01 : f32
    %224 = vector.broadcast %cst_59 : f32 to vector<16x1xf32>
    %225 = arith.divf %223, %224 : vector<16x1xf32>
    %226 = arith.mulf %220, %220 : vector<16x1xf32>
    %227 = arith.subf %225, %226 : vector<16x1xf32>
    %228 = vector.broadcast %220 : vector<16x1xf32> to vector<16x32xf32>
    %229 = arith.subf %216, %228 : vector<16x32xf32>
    %cst_60 = arith.constant 9.99999996E-13 : f32
    %230 = vector.broadcast %cst_60 : f32 to vector<16x1xf32>
    %231 = arith.addf %227, %230 : vector<16x1xf32>
    %232 = math.rsqrt %231 : vector<16x1xf32>
    %233 = vector.broadcast %232 : vector<16x1xf32> to vector<16x32xf32>
    %234 = arith.mulf %229, %233 : vector<16x32xf32>
    %235 = vector.broadcast %58 : vector<1x32xf32> to vector<16x32xf32>
    %236 = arith.mulf %234, %235 : vector<16x32xf32>
    %237 = vector.broadcast %59 : vector<1x32xf32> to vector<16x32xf32>
    %238 = arith.addf %236, %237 : vector<16x32xf32>
    %c1 = arith.constant 1 : index
    %c0_61 = arith.constant 0 : index
    %c0_62 = arith.constant 0 : index
    %239 = vector.load %arg5[%c1, %c0_61, %c0_62] : memref<2x160x96xbf16, #tpu.memory_space<vmem>>, vector<1x160x96xbf16>
    %240 = vector.shape_cast %239 : vector<1x160x96xbf16> to vector<160x96xbf16>
    %241 = vector.extract_strided_slice %240 {offsets = [0, 0], sizes = [32, 96], strides = [1, 1]} : vector<160x96xbf16> to vector<32x96xbf16>
    %242 = vector.extract_strided_slice %240 {offsets = [32, 0], sizes = [32, 32], strides = [1, 1]} : vector<160x96xbf16> to vector<32x32xbf16>
    %243 = vector.extract_strided_slice %240 {offsets = [64, 0], sizes = [32, 64], strides = [1, 1]} : vector<160x96xbf16> to vector<32x64xbf16>
    %244 = vector.extract_strided_slice %240 {offsets = [96, 0], sizes = [64, 32], strides = [1, 1]} : vector<160x96xbf16> to vector<64x32xbf16>
    %c1_63 = arith.constant 1 : index
    %c0_64 = arith.constant 0 : index
    %c0_65 = arith.constant 0 : index
    %245 = vector.load %arg6[%c1_63, %c0_64, %c0_65] : memref<2x8x96xf32, #tpu.memory_space<vmem>>, vector<1x8x96xf32>
    %246 = vector.shape_cast %245 : vector<1x8x96xf32> to vector<8x96xf32>
    %247 = vector.extract_strided_slice %246 {offsets = [0, 0], sizes = [1, 96], strides = [1, 1]} : vector<8x96xf32> to vector<1x96xf32>
    %248 = vector.extract_strided_slice %246 {offsets = [1, 0], sizes = [1, 32], strides = [1, 1]} : vector<8x96xf32> to vector<1x32xf32>
    %249 = vector.extract_strided_slice %246 {offsets = [2, 0], sizes = [1, 32], strides = [1, 1]} : vector<8x96xf32> to vector<1x32xf32>
    %250 = vector.extract_strided_slice %246 {offsets = [3, 0], sizes = [1, 32], strides = [1, 1]} : vector<8x96xf32> to vector<1x32xf32>
    %251 = vector.extract_strided_slice %246 {offsets = [4, 0], sizes = [1, 64], strides = [1, 1]} : vector<8x96xf32> to vector<1x64xf32>
    %252 = vector.extract_strided_slice %246 {offsets = [5, 0], sizes = [1, 32], strides = [1, 1]} : vector<8x96xf32> to vector<1x32xf32>
    %253 = vector.extract_strided_slice %246 {offsets = [6, 0], sizes = [1, 32], strides = [1, 1]} : vector<8x96xf32> to vector<1x32xf32>
    %254 = vector.extract_strided_slice %246 {offsets = [7, 0], sizes = [1, 32], strides = [1, 1]} : vector<8x96xf32> to vector<1x32xf32>
    %255 = arith.truncf %238 : vector<16x32xf32> to vector<16x32xbf16>
    %cst_66 = arith.constant dense<0.000000e+00> : vector<16x96xf32>
    %256 = tpu.matmul %255, %241, %cst_66 {dimension_numbers = #tpu.dot_dimension_numbers<[1], [0], [0], [1], [0, 0, 1, 1], [], []>} : vector<16x32xbf16>, vector<32x96xbf16>, vector<16x96xf32> -> vector<16x96xf32>
    %257 = vector.broadcast %247 : vector<1x96xf32> to vector<16x96xf32>
    %258 = arith.addf %256, %257 : vector<16x96xf32>
    %259 = vector.shape_cast %258 : vector<16x96xf32> to vector<2x8x96xf32>
    %cst_67 = arith.constant 0.000000e+00 : f32
    %260 = vector.broadcast %cst_67 : f32 to vector<2x32xf32>
    %261 = vector.extract_strided_slice %259 {offsets = [0, 0, 0], sizes = [2, 8, 8], strides = [1, 1, 1]} : vector<2x8x96xf32> to vector<2x8x8xf32>
    %262 = arith.truncf %261 : vector<2x8x8xf32> to vector<2x8x8xbf16>
    %263 = vector.extract_strided_slice %259 {offsets = [0, 0, 32], sizes = [2, 8, 8], strides = [1, 1, 1]} : vector<2x8x96xf32> to vector<2x8x8xf32>
    %264 = arith.truncf %263 : vector<2x8x8xf32> to vector<2x8x8xbf16>
    %265 = vector.extract_strided_slice %259 {offsets = [0, 0, 64], sizes = [2, 8, 8], strides = [1, 1, 1]} : vector<2x8x96xf32> to vector<2x8x8xf32>
    %266 = arith.truncf %265 : vector<2x8x8xf32> to vector<2x8x8xbf16>
    "tpu.trace_start"() <{level = 10 : i32, message = "bqd,bkd->bqk"}> : () -> ()
    %cst_68 = arith.constant dense<0.000000e+00> : vector<2x8x8xf32>
    %267 = tpu.matmul %262, %264, %cst_68 {dimension_numbers = #tpu.dot_dimension_numbers<[2], [2], [1], [1], [0, 0, 0, 1, 1, 1], [0], [0]>} : vector<2x8x8xbf16>, vector<2x8x8xbf16>, vector<2x8x8xf32> -> vector<2x8x8xf32>
    "tpu.trace_stop"() : () -> ()
    %268 = vector.broadcast %43 : vector<2x1x8xf32> to vector<2x8x8xf32>
    %269 = arith.addf %267, %268 : vector<2x8x8xf32>
    %cst_69 = arith.constant dense<0xFF800000> : vector<2x8xf32>
    %270 = vector.multi_reduction <maximumf>, %269, %cst_69 [2] : vector<2x8x8xf32> to vector<2x8xf32>
    %271 = vector.shape_cast %270 : vector<2x8xf32> to vector<2x8x1xf32>
    %272 = vector.broadcast %271 : vector<2x8x1xf32> to vector<2x8x8xf32>
    %273 = arith.subf %269, %272 : vector<2x8x8xf32>
    %274 = math.exp %273 : vector<2x8x8xf32>
    %cst_70 = arith.constant dense<0.000000e+00> : vector<2x8xf32>
    %275 = vector.multi_reduction <add>, %274, %cst_70 [2] : vector<2x8x8xf32> to vector<2x8xf32>
    %276 = vector.shape_cast %275 : vector<2x8xf32> to vector<2x8x1xf32>
    %277 = tpu.reciprocal %276 {approx = true} : vector<2x8x1xf32> -> vector<2x8x1xf32>
    %278 = vector.broadcast %277 : vector<2x8x1xf32> to vector<2x8x8xf32>
    %279 = arith.mulf %274, %278 : vector<2x8x8xf32>
    %280 = arith.truncf %279 : vector<2x8x8xf32> to vector<2x8x8xbf16>
    "tpu.trace_start"() <{level = 10 : i32, message = "bqk,bkd->bqd"}> : () -> ()
    %cst_71 = arith.constant dense<0.000000e+00> : vector<2x8x8xf32>
    %281 = tpu.matmul %280, %266, %cst_71 {dimension_numbers = #tpu.dot_dimension_numbers<[2], [1], [1], [2], [0, 0, 0, 1, 1, 2], [0], [0]>} : vector<2x8x8xbf16>, vector<2x8x8xbf16>, vector<2x8x8xf32> -> vector<2x8x8xf32>
    "tpu.trace_stop"() : () -> ()
    %282 = vector.extract_strided_slice %281 {offsets = [0, 0, 0], sizes = [2, 1, 8], strides = [1, 1, 1]} : vector<2x8x8xf32> to vector<2x1x8xf32>
    %283 = vector.shape_cast %282 : vector<2x1x8xf32> to vector<2x8xf32>
    %284 = vector.extract_strided_slice %242 {offsets = [0, 0], sizes = [8, 32], strides = [1, 1]} : vector<32x32xbf16> to vector<8x32xbf16>
    %285 = arith.truncf %283 : vector<2x8xf32> to vector<2x8xbf16>
    %cst_72 = arith.constant dense<0.000000e+00> : vector<2x32xf32>
    %286 = tpu.matmul %285, %284, %cst_72 {dimension_numbers = #tpu.dot_dimension_numbers<[1], [0], [0], [1], [0, 0, 1, 1], [], []>} : vector<2x8xbf16>, vector<8x32xbf16>, vector<2x32xf32> -> vector<2x32xf32>
    %287 = arith.addf %260, %286 : vector<2x32xf32>
    %288 = vector.extract_strided_slice %259 {offsets = [0, 0, 8], sizes = [2, 8, 8], strides = [1, 1, 1]} : vector<2x8x96xf32> to vector<2x8x8xf32>
    %289 = arith.truncf %288 : vector<2x8x8xf32> to vector<2x8x8xbf16>
    %290 = vector.extract_strided_slice %259 {offsets = [0, 0, 40], sizes = [2, 8, 8], strides = [1, 1, 1]} : vector<2x8x96xf32> to vector<2x8x8xf32>
    %291 = arith.truncf %290 : vector<2x8x8xf32> to vector<2x8x8xbf16>
    %292 = vector.extract_strided_slice %259 {offsets = [0, 0, 72], sizes = [2, 8, 8], strides = [1, 1, 1]} : vector<2x8x96xf32> to vector<2x8x8xf32>
    %293 = arith.truncf %292 : vector<2x8x8xf32> to vector<2x8x8xbf16>
    "tpu.trace_start"() <{level = 10 : i32, message = "bqd,bkd->bqk"}> : () -> ()
    %cst_73 = arith.constant dense<0.000000e+00> : vector<2x8x8xf32>
    %294 = tpu.matmul %289, %291, %cst_73 {dimension_numbers = #tpu.dot_dimension_numbers<[2], [2], [1], [1], [0, 0, 0, 1, 1, 1], [0], [0]>} : vector<2x8x8xbf16>, vector<2x8x8xbf16>, vector<2x8x8xf32> -> vector<2x8x8xf32>
    "tpu.trace_stop"() : () -> ()
    %295 = vector.broadcast %43 : vector<2x1x8xf32> to vector<2x8x8xf32>
    %296 = arith.addf %294, %295 : vector<2x8x8xf32>
    %cst_74 = arith.constant dense<0xFF800000> : vector<2x8xf32>
    %297 = vector.multi_reduction <maximumf>, %296, %cst_74 [2] : vector<2x8x8xf32> to vector<2x8xf32>
    %298 = vector.shape_cast %297 : vector<2x8xf32> to vector<2x8x1xf32>
    %299 = vector.broadcast %298 : vector<2x8x1xf32> to vector<2x8x8xf32>
    %300 = arith.subf %296, %299 : vector<2x8x8xf32>
    %301 = math.exp %300 : vector<2x8x8xf32>
    %cst_75 = arith.constant dense<0.000000e+00> : vector<2x8xf32>
    %302 = vector.multi_reduction <add>, %301, %cst_75 [2] : vector<2x8x8xf32> to vector<2x8xf32>
    %303 = vector.shape_cast %302 : vector<2x8xf32> to vector<2x8x1xf32>
    %304 = tpu.reciprocal %303 {approx = true} : vector<2x8x1xf32> -> vector<2x8x1xf32>
    %305 = vector.broadcast %304 : vector<2x8x1xf32> to vector<2x8x8xf32>
    %306 = arith.mulf %301, %305 : vector<2x8x8xf32>
    %307 = arith.truncf %306 : vector<2x8x8xf32> to vector<2x8x8xbf16>
    "tpu.trace_start"() <{level = 10 : i32, message = "bqk,bkd->bqd"}> : () -> ()
    %cst_76 = arith.constant dense<0.000000e+00> : vector<2x8x8xf32>
    %308 = tpu.matmul %307, %293, %cst_76 {dimension_numbers = #tpu.dot_dimension_numbers<[2], [1], [1], [2], [0, 0, 0, 1, 1, 2], [0], [0]>} : vector<2x8x8xbf16>, vector<2x8x8xbf16>, vector<2x8x8xf32> -> vector<2x8x8xf32>
    "tpu.trace_stop"() : () -> ()
    %309 = vector.extract_strided_slice %308 {offsets = [0, 0, 0], sizes = [2, 1, 8], strides = [1, 1, 1]} : vector<2x8x8xf32> to vector<2x1x8xf32>
    %310 = vector.shape_cast %309 : vector<2x1x8xf32> to vector<2x8xf32>
    %311 = vector.extract_strided_slice %242 {offsets = [8, 0], sizes = [8, 32], strides = [1, 1]} : vector<32x32xbf16> to vector<8x32xbf16>
    %312 = arith.truncf %310 : vector<2x8xf32> to vector<2x8xbf16>
    %cst_77 = arith.constant dense<0.000000e+00> : vector<2x32xf32>
    %313 = tpu.matmul %312, %311, %cst_77 {dimension_numbers = #tpu.dot_dimension_numbers<[1], [0], [0], [1], [0, 0, 1, 1], [], []>} : vector<2x8xbf16>, vector<8x32xbf16>, vector<2x32xf32> -> vector<2x32xf32>
    %314 = arith.addf %287, %313 : vector<2x32xf32>
    %315 = vector.extract_strided_slice %259 {offsets = [0, 0, 16], sizes = [2, 8, 8], strides = [1, 1, 1]} : vector<2x8x96xf32> to vector<2x8x8xf32>
    %316 = arith.truncf %315 : vector<2x8x8xf32> to vector<2x8x8xbf16>
    %317 = vector.extract_strided_slice %259 {offsets = [0, 0, 48], sizes = [2, 8, 8], strides = [1, 1, 1]} : vector<2x8x96xf32> to vector<2x8x8xf32>
    %318 = arith.truncf %317 : vector<2x8x8xf32> to vector<2x8x8xbf16>
    %319 = vector.extract_strided_slice %259 {offsets = [0, 0, 80], sizes = [2, 8, 8], strides = [1, 1, 1]} : vector<2x8x96xf32> to vector<2x8x8xf32>
    %320 = arith.truncf %319 : vector<2x8x8xf32> to vector<2x8x8xbf16>
    "tpu.trace_start"() <{level = 10 : i32, message = "bqd,bkd->bqk"}> : () -> ()
    %cst_78 = arith.constant dense<0.000000e+00> : vector<2x8x8xf32>
    %321 = tpu.matmul %316, %318, %cst_78 {dimension_numbers = #tpu.dot_dimension_numbers<[2], [2], [1], [1], [0, 0, 0, 1, 1, 1], [0], [0]>} : vector<2x8x8xbf16>, vector<2x8x8xbf16>, vector<2x8x8xf32> -> vector<2x8x8xf32>
    "tpu.trace_stop"() : () -> ()
    %322 = vector.broadcast %43 : vector<2x1x8xf32> to vector<2x8x8xf32>
    %323 = arith.addf %321, %322 : vector<2x8x8xf32>
    %cst_79 = arith.constant dense<0xFF800000> : vector<2x8xf32>
    %324 = vector.multi_reduction <maximumf>, %323, %cst_79 [2] : vector<2x8x8xf32> to vector<2x8xf32>
    %325 = vector.shape_cast %324 : vector<2x8xf32> to vector<2x8x1xf32>
    %326 = vector.broadcast %325 : vector<2x8x1xf32> to vector<2x8x8xf32>
    %327 = arith.subf %323, %326 : vector<2x8x8xf32>
    %328 = math.exp %327 : vector<2x8x8xf32>
    %cst_80 = arith.constant dense<0.000000e+00> : vector<2x8xf32>
    %329 = vector.multi_reduction <add>, %328, %cst_80 [2] : vector<2x8x8xf32> to vector<2x8xf32>
    %330 = vector.shape_cast %329 : vector<2x8xf32> to vector<2x8x1xf32>
    %331 = tpu.reciprocal %330 {approx = true} : vector<2x8x1xf32> -> vector<2x8x1xf32>
    %332 = vector.broadcast %331 : vector<2x8x1xf32> to vector<2x8x8xf32>
    %333 = arith.mulf %328, %332 : vector<2x8x8xf32>
    %334 = arith.truncf %333 : vector<2x8x8xf32> to vector<2x8x8xbf16>
    "tpu.trace_start"() <{level = 10 : i32, message = "bqk,bkd->bqd"}> : () -> ()
    %cst_81 = arith.constant dense<0.000000e+00> : vector<2x8x8xf32>
    %335 = tpu.matmul %334, %320, %cst_81 {dimension_numbers = #tpu.dot_dimension_numbers<[2], [1], [1], [2], [0, 0, 0, 1, 1, 2], [0], [0]>} : vector<2x8x8xbf16>, vector<2x8x8xbf16>, vector<2x8x8xf32> -> vector<2x8x8xf32>
    "tpu.trace_stop"() : () -> ()
    %336 = vector.extract_strided_slice %335 {offsets = [0, 0, 0], sizes = [2, 1, 8], strides = [1, 1, 1]} : vector<2x8x8xf32> to vector<2x1x8xf32>
    %337 = vector.shape_cast %336 : vector<2x1x8xf32> to vector<2x8xf32>
    %338 = vector.extract_strided_slice %242 {offsets = [16, 0], sizes = [8, 32], strides = [1, 1]} : vector<32x32xbf16> to vector<8x32xbf16>
    %339 = arith.truncf %337 : vector<2x8xf32> to vector<2x8xbf16>
    %cst_82 = arith.constant dense<0.000000e+00> : vector<2x32xf32>
    %340 = tpu.matmul %339, %338, %cst_82 {dimension_numbers = #tpu.dot_dimension_numbers<[1], [0], [0], [1], [0, 0, 1, 1], [], []>} : vector<2x8xbf16>, vector<8x32xbf16>, vector<2x32xf32> -> vector<2x32xf32>
    %341 = arith.addf %314, %340 : vector<2x32xf32>
    %342 = vector.extract_strided_slice %259 {offsets = [0, 0, 24], sizes = [2, 8, 8], strides = [1, 1, 1]} : vector<2x8x96xf32> to vector<2x8x8xf32>
    %343 = arith.truncf %342 : vector<2x8x8xf32> to vector<2x8x8xbf16>
    %344 = vector.extract_strided_slice %259 {offsets = [0, 0, 56], sizes = [2, 8, 8], strides = [1, 1, 1]} : vector<2x8x96xf32> to vector<2x8x8xf32>
    %345 = arith.truncf %344 : vector<2x8x8xf32> to vector<2x8x8xbf16>
    %346 = vector.extract_strided_slice %259 {offsets = [0, 0, 88], sizes = [2, 8, 8], strides = [1, 1, 1]} : vector<2x8x96xf32> to vector<2x8x8xf32>
    %347 = arith.truncf %346 : vector<2x8x8xf32> to vector<2x8x8xbf16>
    "tpu.trace_start"() <{level = 10 : i32, message = "bqd,bkd->bqk"}> : () -> ()
    %cst_83 = arith.constant dense<0.000000e+00> : vector<2x8x8xf32>
    %348 = tpu.matmul %343, %345, %cst_83 {dimension_numbers = #tpu.dot_dimension_numbers<[2], [2], [1], [1], [0, 0, 0, 1, 1, 1], [0], [0]>} : vector<2x8x8xbf16>, vector<2x8x8xbf16>, vector<2x8x8xf32> -> vector<2x8x8xf32>
    "tpu.trace_stop"() : () -> ()
    %349 = vector.broadcast %43 : vector<2x1x8xf32> to vector<2x8x8xf32>
    %350 = arith.addf %348, %349 : vector<2x8x8xf32>
    %cst_84 = arith.constant dense<0xFF800000> : vector<2x8xf32>
    %351 = vector.multi_reduction <maximumf>, %350, %cst_84 [2] : vector<2x8x8xf32> to vector<2x8xf32>
    %352 = vector.shape_cast %351 : vector<2x8xf32> to vector<2x8x1xf32>
    %353 = vector.broadcast %352 : vector<2x8x1xf32> to vector<2x8x8xf32>
    %354 = arith.subf %350, %353 : vector<2x8x8xf32>
    %355 = math.exp %354 : vector<2x8x8xf32>
    %cst_85 = arith.constant dense<0.000000e+00> : vector<2x8xf32>
    %356 = vector.multi_reduction <add>, %355, %cst_85 [2] : vector<2x8x8xf32> to vector<2x8xf32>
    %357 = vector.shape_cast %356 : vector<2x8xf32> to vector<2x8x1xf32>
    %358 = tpu.reciprocal %357 {approx = true} : vector<2x8x1xf32> -> vector<2x8x1xf32>
    %359 = vector.broadcast %358 : vector<2x8x1xf32> to vector<2x8x8xf32>
    %360 = arith.mulf %355, %359 : vector<2x8x8xf32>
    %361 = arith.truncf %360 : vector<2x8x8xf32> to vector<2x8x8xbf16>
    "tpu.trace_start"() <{level = 10 : i32, message = "bqk,bkd->bqd"}> : () -> ()
    %cst_86 = arith.constant dense<0.000000e+00> : vector<2x8x8xf32>
    %362 = tpu.matmul %361, %347, %cst_86 {dimension_numbers = #tpu.dot_dimension_numbers<[2], [1], [1], [2], [0, 0, 0, 1, 1, 2], [0], [0]>} : vector<2x8x8xbf16>, vector<2x8x8xbf16>, vector<2x8x8xf32> -> vector<2x8x8xf32>
    "tpu.trace_stop"() : () -> ()
    %363 = vector.extract_strided_slice %362 {offsets = [0, 0, 0], sizes = [2, 1, 8], strides = [1, 1, 1]} : vector<2x8x8xf32> to vector<2x1x8xf32>
    %364 = vector.shape_cast %363 : vector<2x1x8xf32> to vector<2x8xf32>
    %365 = vector.extract_strided_slice %242 {offsets = [24, 0], sizes = [8, 32], strides = [1, 1]} : vector<32x32xbf16> to vector<8x32xbf16>
    %366 = arith.truncf %364 : vector<2x8xf32> to vector<2x8xbf16>
    %cst_87 = arith.constant dense<0.000000e+00> : vector<2x32xf32>
    %367 = tpu.matmul %366, %365, %cst_87 {dimension_numbers = #tpu.dot_dimension_numbers<[1], [0], [0], [1], [0, 0, 1, 1], [], []>} : vector<2x8xbf16>, vector<8x32xbf16>, vector<2x32xf32> -> vector<2x32xf32>
    %368 = arith.addf %341, %367 : vector<2x32xf32>
    %369 = vector.shape_cast %238 : vector<16x32xf32> to vector<2x8x32xf32>
    %370 = vector.extract_strided_slice %369 {offsets = [0, 0, 0], sizes = [2, 1, 32], strides = [1, 1, 1]} : vector<2x8x32xf32> to vector<2x1x32xf32>
    %371 = vector.shape_cast %370 : vector<2x1x32xf32> to vector<2x32xf32>
    %372 = arith.addf %371, %368 : vector<2x32xf32>
    %373 = vector.broadcast %248 : vector<1x32xf32> to vector<2x32xf32>
    %374 = arith.addf %372, %373 : vector<2x32xf32>
    %cst_88 = arith.constant dense<0.000000e+00> : vector<2xf32>
    %375 = vector.multi_reduction <add>, %374, %cst_88 [1] : vector<2x32xf32> to vector<2xf32>
    %376 = vector.shape_cast %375 : vector<2xf32> to vector<2x1xf32>
    %cst_89 = arith.constant 3.200000e+01 : f32
    %377 = vector.broadcast %cst_89 : f32 to vector<2x1xf32>
    %378 = arith.divf %376, %377 : vector<2x1xf32>
    %379 = arith.mulf %374, %374 : vector<2x32xf32>
    %cst_90 = arith.constant dense<0.000000e+00> : vector<2xf32>
    %380 = vector.multi_reduction <add>, %379, %cst_90 [1] : vector<2x32xf32> to vector<2xf32>
    %381 = vector.shape_cast %380 : vector<2xf32> to vector<2x1xf32>
    %cst_91 = arith.constant 3.200000e+01 : f32
    %382 = vector.broadcast %cst_91 : f32 to vector<2x1xf32>
    %383 = arith.divf %381, %382 : vector<2x1xf32>
    %384 = arith.mulf %378, %378 : vector<2x1xf32>
    %385 = arith.subf %383, %384 : vector<2x1xf32>
    %386 = vector.broadcast %378 : vector<2x1xf32> to vector<2x32xf32>
    %387 = arith.subf %374, %386 : vector<2x32xf32>
    %cst_92 = arith.constant 9.99999996E-13 : f32
    %388 = vector.broadcast %cst_92 : f32 to vector<2x1xf32>
    %389 = arith.addf %385, %388 : vector<2x1xf32>
    %390 = math.rsqrt %389 : vector<2x1xf32>
    %391 = vector.broadcast %390 : vector<2x1xf32> to vector<2x32xf32>
    %392 = arith.mulf %387, %391 : vector<2x32xf32>
    %393 = vector.broadcast %249 : vector<1x32xf32> to vector<2x32xf32>
    %394 = arith.mulf %392, %393 : vector<2x32xf32>
    %395 = vector.broadcast %250 : vector<1x32xf32> to vector<2x32xf32>
    %396 = arith.addf %394, %395 : vector<2x32xf32>
    %397 = arith.truncf %396 : vector<2x32xf32> to vector<2x32xbf16>
    %cst_93 = arith.constant dense<0.000000e+00> : vector<2x64xf32>
    %398 = tpu.matmul %397, %243, %cst_93 {dimension_numbers = #tpu.dot_dimension_numbers<[1], [0], [0], [1], [0, 0, 1, 1], [], []>} : vector<2x32xbf16>, vector<32x64xbf16>, vector<2x64xf32> -> vector<2x64xf32>
    %399 = vector.broadcast %251 : vector<1x64xf32> to vector<2x64xf32>
    %400 = arith.addf %398, %399 : vector<2x64xf32>
    %401 = arith.mulf %400, %400 : vector<2x64xf32>
    %402 = arith.mulf %400, %401 : vector<2x64xf32>
    %cst_94 = arith.constant 4.471500e-02 : f32
    %403 = vector.broadcast %cst_94 : f32 to vector<2x64xf32>
    %404 = arith.mulf %403, %402 : vector<2x64xf32>
    %405 = arith.addf %400, %404 : vector<2x64xf32>
    %cst_95 = arith.constant 0.797884583 : f32
    %406 = vector.broadcast %cst_95 : f32 to vector<2x64xf32>
    %407 = arith.mulf %406, %405 : vector<2x64xf32>
    %408 = math.tanh %407 : vector<2x64xf32>
    %cst_96 = arith.constant 1.000000e+00 : f32
    %409 = vector.broadcast %cst_96 : f32 to vector<2x64xf32>
    %410 = arith.addf %409, %408 : vector<2x64xf32>
    %cst_97 = arith.constant 5.000000e-01 : f32
    %411 = vector.broadcast %cst_97 : f32 to vector<2x64xf32>
    %412 = arith.mulf %411, %410 : vector<2x64xf32>
    %413 = arith.mulf %400, %412 : vector<2x64xf32>
    %414 = arith.truncf %413 : vector<2x64xf32> to vector<2x64xbf16>
    %cst_98 = arith.constant dense<0.000000e+00> : vector<2x32xf32>
    %415 = tpu.matmul %414, %244, %cst_98 {dimension_numbers = #tpu.dot_dimension_numbers<[1], [0], [0], [1], [0, 0, 1, 1], [], []>} : vector<2x64xbf16>, vector<64x32xbf16>, vector<2x32xf32> -> vector<2x32xf32>
    %416 = vector.broadcast %252 : vector<1x32xf32> to vector<2x32xf32>
    %417 = arith.addf %415, %416 : vector<2x32xf32>
    %418 = arith.addf %396, %417 : vector<2x32xf32>
    %cst_99 = arith.constant dense<0.000000e+00> : vector<2xf32>
    %419 = vector.multi_reduction <add>, %418, %cst_99 [1] : vector<2x32xf32> to vector<2xf32>
    %420 = vector.shape_cast %419 : vector<2xf32> to vector<2x1xf32>
    %cst_100 = arith.constant 3.200000e+01 : f32
    %421 = vector.broadcast %cst_100 : f32 to vector<2x1xf32>
    %422 = arith.divf %420, %421 : vector<2x1xf32>
    %423 = arith.mulf %418, %418 : vector<2x32xf32>
    %cst_101 = arith.constant dense<0.000000e+00> : vector<2xf32>
    %424 = vector.multi_reduction <add>, %423, %cst_101 [1] : vector<2x32xf32> to vector<2xf32>
    %425 = vector.shape_cast %424 : vector<2xf32> to vector<2x1xf32>
    %cst_102 = arith.constant 3.200000e+01 : f32
    %426 = vector.broadcast %cst_102 : f32 to vector<2x1xf32>
    %427 = arith.divf %425, %426 : vector<2x1xf32>
    %428 = arith.mulf %422, %422 : vector<2x1xf32>
    %429 = arith.subf %427, %428 : vector<2x1xf32>
    %430 = vector.broadcast %422 : vector<2x1xf32> to vector<2x32xf32>
    %431 = arith.subf %418, %430 : vector<2x32xf32>
    %cst_103 = arith.constant 9.99999996E-13 : f32
    %432 = vector.broadcast %cst_103 : f32 to vector<2x1xf32>
    %433 = arith.addf %429, %432 : vector<2x1xf32>
    %434 = math.rsqrt %433 : vector<2x1xf32>
    %435 = vector.broadcast %434 : vector<2x1xf32> to vector<2x32xf32>
    %436 = arith.mulf %431, %435 : vector<2x32xf32>
    %437 = vector.broadcast %253 : vector<1x32xf32> to vector<2x32xf32>
    %438 = arith.mulf %436, %437 : vector<2x32xf32>
    %439 = vector.broadcast %254 : vector<1x32xf32> to vector<2x32xf32>
    %440 = arith.addf %438, %439 : vector<2x32xf32>
    %c0_104 = arith.constant 0 : index
    %c0_105 = arith.constant 0 : index
    %441 = vector.load %arg7[%c0_104, %c0_105] : memref<2x32xf32, #tpu.memory_space<vmem>>, vector<2x32xf32>
    tpu.vector_store %arg7[%c0_104, %c0_105], %440 {strides = array<i32>} : memref<2x32xf32, #tpu.memory_space<vmem>>, vector<2x32xf32>,
    return
  }
  func.func @transform_0(%arg0: i32) -> (i32, i32) {
    %c0_i32 = arith.constant 0 : i32
    %c0_i32_0 = arith.constant 0 : i32
    %c0_i32_1 = arith.constant 0 : i32
    return %c0_i32, %c0_i32_0 : i32, i32
  }
  func.func @transform_1(%arg0: i32) -> (i32, i32, i32) {
    %c0_i32 = arith.constant 0 : i32
    %c0_i32_0 = arith.constant 0 : i32
    %c0_i32_1 = arith.constant 0 : i32
    %c0_i32_2 = arith.constant 0 : i32
    return %c0_i32, %c0_i32_0, %c0_i32_1 : i32, i32, i32
  }
  func.func @transform_2(%arg0: i32) -> (i32, i32) {
    %c0_i32 = arith.constant 0 : i32
    %c0_i32_0 = arith.constant 0 : i32
    %c0_i32_1 = arith.constant 0 : i32
    return %c0_i32, %c0_i32_0 : i32, i32
  }
  func.func @transform_3(%arg0: i32) -> (i32, i32) {
    %c0_i32 = arith.constant 0 : i32
    %c0_i32_0 = arith.constant 0 : i32
    %c0_i32_1 = arith.constant 0 : i32
    return %c0_i32, %c0_i32_0 : i32, i32
  }
  func.func @transform_4(%arg0: i32) -> (i32, i32, i32) {
    %c0_i32 = arith.constant 0 : i32
    %c0_i32_0 = arith.constant 0 : i32
    %c0_i32_1 = arith.constant 0 : i32
    %c0_i32_2 = arith.constant 0 : i32
    return %c0_i32, %c0_i32_0, %c0_i32_1 : i32, i32, i32
  }
  func.func @transform_5(%arg0: i32) -> (i32, i32, i32) {
    %c0_i32 = arith.constant 0 : i32
    %c0_i32_0 = arith.constant 0 : i32
    %c0_i32_1 = arith.constant 0 : i32
    %c0_i32_2 = arith.constant 0 : i32
    return %c0_i32, %c0_i32_0, %c0_i32_1 : i32, i32, i32
  }
  func.func @transform_6(%arg0: i32) -> (i32, i32) {
    %c0_i32 = arith.constant 0 : i32
    %c0_i32_0 = arith.constant 0 : i32
    %c0_i32_1 = arith.constant 0 : i32
    return %c0_i32, %c0_i32_0 : i32, i32
  }
}

</mosaic_0001>

<bundles_post_ra>
// kernel: finetune_model_forward.1
= control target key start
LH: loop header
LB: loop body
LE: loop exit
PB: predicated region body
PF: predicated region fallthrough
CT: control target
= control target key end

     0   :  { %11 = vsyncpa [#allocation3], 0  ;;  %s2637_s0 = inlined_call_operand.vmem [shape: s32[16,1], index: 0, kind: input, shape index: {}]   ;;  %s2638_s1 = inlined_call_operand.vmem [shape: f32[2,1,8], index: 1, kind: input, shape index: {}]   ;;  %s2639_s2 = inlined_call_operand.vmem [shape: bf16[128,32], index: 2, kind: input, shape index: {}]   ;;  %s2640_s3 = inlined_call_operand.vmem [shape: f32[18,32], index: 3, kind: input, shape index: {}]   ;;  %s2641_s4 = inlined_call_operand.hbm [shape: bf16[2,160,96], index: 4, kind: input, shape index: {}]   ;;  %s2642_s5 = inlined_call_operand.vmem [shape: f32[2,8,96], index: 5, kind: input, shape index: {}]   ;;  %s2643_s6 = inlined_call_operand.hbm [shape: f32[2,32], index: 6, kind: output, shape index: {}]  }
   0x1   :  { %12 = vsyncpa [#allocation4], 0  ;;  %s25_s23 = sshll.u32 %s2641_s4, 4  ;;  %s2199_s24 = smov [#allocation2]   ;;  %s26_s23 = int_to_ptr.hbm [resolvable:$true] %s25_s23 }
   0x2   :  { %s27_s25 = sshll.u32 %s2199_s24, 4  ;;  %s2200_s26 = smov 64   ;;  %s28_s25 = int_to_ptr.vmem [resolvable:$true] %s27_s25 }
   0x3   :  { %s2201_s27 = smov 4  }
   0x4   :  { %33 = dma.hbm_to_vmem [thread:$0]  %s26_s23, 2560, %s28_s25, [#allocation3], %s2200_s26, %s2200_s26, %s2201_s27  }
   0x5   :  { %2195 = dma.done.wait [#allocation3], 2560  }
   0x6   :  { %2196 = vsyncadd [#allocation3], 4294964736  ;;  %v2202_v0 = vmov 0   ;;  %v41_v1 = vld [vmem:[%s2637_s0] sm:$0xff]  ;;  %v2022_v2 = vld [vmem:[%s2639_s2 + $0x38] sm:$0xff]  ;;  %v43_v12 = vlaneseq  ;;  %vm141_vm3 = vcmask 261120  }
   0x7   :  { %2056 = vset.pattern.permute.xlu0 %v2202_v0  ;;  %122 = vmatpush.bf16.msra.mxu0 %v2022_v2  ;;  %v2021_v3 = vld [vmem:[%s2639_s2 + $0x30] sm:$0xff]  ;;  %v42_v4 = vld [vmem:[%s2637_s0 + $0x8] sm:$0xff]  ;;  %v2019_v6 = vld [vmem:[%s2639_s2 + $0x20] sm:$0xff]  ;;  %v2203_v15 = vmov 1.0|1.0   ;;  %v2204_v27 = vmov 32.0  }
   0x8   :  { %46 = vperm.xlu0 %2056, %v41_v1   ;;  %v2020_v5 = vld [vmem:[%s2639_s2 + $0x28] sm:$0xff]  ;;  %v2018_v7 = vld [vmem:[%s2639_s2 + $0x18] sm:$0xff]  ;;  %v2017_v8 = vld [vmem:[%s2639_s2 + $0x10] sm:$0xff]  ;;  %v44_v13 = vand.u32 127, %v43_v12  ;;  %2059 = vrcp.f32 %v2204_v27  ;;  %s2206_s30 = smov 96   ;;  %s2207_s7 = smov 120  }
   0x9   :  { %v2016_v9 = vld [vmem:[%s2639_s2 + $0x8] sm:$0xff]  ;;  %v2015_v10 = vld [vmem:[%s2639_s2] sm:$0xff]  ;;  %v2057_v0 = vld [vmem:[%s2640_s3 + $0x10] ss:$0 sm:$0xff]  ;;  %vm274_vm11 = vcmask 64512   ;;  %vm347_vm12 = vcmask 1043456  }
   0xa   :  { %v136_v16 = vld [vmem:[%s2640_s3] sm:$0xff]  ;;  %v2024_v37 = vld [vmem:[#allocation2 + $0x8] sm:$0xff]  ;;  %s2209_s11 = smov 56   ;;  %s2210_s12 = smov 80  }
   0xb   :  { %123 = vmatpush.bf16.msra.mxu0 %v2021_v3  ;;  %253 = vmatpush.bf16.msra.mxu1 %v2024_v37  ;;  %v2023_v40 = vld [vmem:[#allocation2] sm:$0xff]  ;;  %s2211_s13 = smov 48   ;;  %s2212_s14 = smov 72  }
   0xc   :  { %s2213_s15 = smov 104   ;;  %s2214_s16 = smov 40  }
   0xd   :  { %s1858_s20 = sshll.u32 %s2643_s6, 4  ;;  %s1859_s20 = int_to_ptr.hbm [resolvable:$true] %s1858_s20 }
   0xe   :  { %v2060_v28 = vpop.eup %2059 }
   0xf   :  { %124 = vmatpush.bf16.msra.mxu0 %v2020_v5  ;;  %v149_v29 = vmul.f32 32.0, %v2060_v28  ;;  %vm153_vm4 = vweird.f32 %v2060_v28  ;;  %254 = vmatpush.bf16.msra.mxu1 %v2023_v40 }
  0x10   :  { %49 = vperm.xlu0 %2056, %v42_v4  }
  0x11   :  { %v150_v30 = vsub.f32 1.0, %v149_v29 }
  0x13   :  { %125 = vmatpush.bf16.msra.mxu0 %v2019_v6  ;;  %v151_v31 = vmul.f32 %v2060_v28, %v150_v30  ;;  %v2058_v6 = vld [vmem:[%s2640_s3 + $0x11] ss:$0 sm:$0xff]  ;;  %s2205_s3 = smov 88  }
  0x15   :  { %v152_v32 = vadd.f32 %v2060_v28, %v151_v31 }
  0x17   :  { %126 = vmatpush.bf16.msra.mxu0 %v2018_v7  ;;  %v2293_v33 = vsel %vm153_vm4, %v2060_v28, %v152_v32  ;;  %vm943_vm4 = vcmask 523264  }
  0x1b   :  { %127 = vmatpush.bf16.msra.mxu0 %v2017_v8 }
  0x1f   :  { %128 = vmatpush.bf16.msra.mxu0 %v2016_v9 }
  0x23   :  { %129 = vmatpush.bf16.msra.mxu0 %v2015_v10 }
  0x7a   :  { %v47_v11 = vpop.permute.xlu0 %46 }
  0x7b   :  { %vm51_vm0 = vcmp.eq.s32.totalorder %v44_v13, %v47_v11  ;;  %v2315_v11 = vld [vmem:[%s2642_s5] sm:$0xff] }
  0x7c   :  { %v231_v12 = vperm.slane %v2315_v11, 0 }
  0x82   :  { %v50_v14 = vpop.permute.xlu0 %49 }
  0x83   :  { %vm52_vm1 = vcmp.eq.s32.totalorder %v44_v13, %v50_v14 }
  0x84   :  { %vm1902_vm2 = vmpackc.low %vm52_vm1, %vm51_vm0 }
  0x85   :  { %1903 = vmatmul.msk.bf16.vlgmr.msra.gmra.mxu0 %vm1902_vm2, %v2203_v15 }
 0x102   :  { %v131_v17 = vpop.f32.mrf.mxu0 }
 0x103   :  { %v139_v18 = vadd.f32 %v136_v16, %v131_v17 }
 0x105   :  { %v142_v19 = vsel %vm141_vm3, %v139_v18, 0.0  ;;  %v157_v20 = vmul.f32 %v139_v18, %v139_v18 }
 0x106   :  { %143 = vadd.xlane.f32.xlu1 %v142_v19 }
 0x107   :  { %v159_v21 = vsel %vm141_vm3, %v157_v20, 0.0 }
 0x108   :  { %160 = vadd.xlane.f32.xlu2 %v159_v21 }
 0x10a   :  { %v133_v22 = vpop.f32.mrf.mxu0 }
 0x10b   :  { %v140_v23 = vadd.f32 %v136_v16, %v133_v22 }
 0x10d   :  { %v145_v24 = vsel %vm141_vm3, %v140_v23, 0.0  ;;  %v158_v25 = vmul.f32 %v140_v23, %v140_v23 }
 0x10e   :  { %146 = vadd.xlane.f32.xlu1 %v145_v24 }
 0x10f   :  { %v162_v26 = vsel %vm141_vm3, %v158_v25, 0.0 }
 0x110   :  { %163 = vadd.xlane.f32.xlu2 %v162_v26 }
 0x179   :  { %v144_v34 = vpop.xlane.xlu1 %143 }
 0x17a   :  { %v155_v35 = vmul.f32 %v2293_v33, %v144_v34 }
 0x17b   :  { %v161_v36 = vpop.xlane.xlu2 %160 }
 0x17c   :  { %v167_v38 = vmul.f32 %v155_v35, %v155_v35  ;;  %v165_v39 = vmul.f32 %v161_v36, %v2293_v33  ;;  %v171_v61 = vsub.f32 %v139_v18, %v155_v35  ;;  %v203_v35 = vld [vmem:[%s2638_s1] sm:$0x1] }
 0x17d   :  { %v205_v36 = vsub.f32 1.0, %v203_v35 }
 0x17e   :  { %v169_v41 = vsub.f32 %v165_v39, %v167_v38  ;;  %v204_v38 = vld [vmem:[%s2638_s1 + $0x1] sm:$0x1]  ;;  %s2208_s1 = smov 112  }
 0x17f   :  { %v207_v37 = vmul.f32 -1e+09, %v205_v36  ;;  %v206_v40 = vsub.f32 1.0, %v204_v38  ;;  %v213_v36 = vld [vmem:[#allocation2 + $0x10] sm:$0xf] }
 0x180   :  { %v173_v42 = vadd.f32 1e-12, %v169_v41 }
 0x181   :  { %v147_v43 = vpop.xlane.xlu1 %146  ;;  %v2350_v39 = vperm.slane %v207_v37, 0  ;;  %v523_v37 = vsel %vm347_vm12, %v213_v36, 0 }
 0x182   :  { %2061 = vrsqrt.f32 %v173_v42  ;;  %v156_v44 = vmul.f32 %v2293_v33, %v147_v43  ;;  %vm181_vm6 = vweird.f32 %v173_v42  ;;  %v208_v43 = vmul.f32 -1e+09, %v206_v40 }
 0x183   :  { %v164_v45 = vpop.xlane.xlu2 %163 }
 0x184   :  { %v168_v46 = vmul.f32 %v156_v44, %v156_v44  ;;  %v166_v47 = vmul.f32 %v164_v45, %v2293_v33  ;;  %v172_v2 = vsub.f32 %v140_v23, %v156_v44  ;;  %v2354_v45 = vperm.slane %v208_v43, 0 }
 0x186   :  { %v170_v48 = vsub.f32 %v166_v47, %v168_v46 }
 0x188   :  { %v2062_v49 = vpop.eup %2061  ;;  %v174_v50 = vadd.f32 1e-12, %v170_v48 }
 0x189   :  { %v176_v51 = vmul.f32 %v2062_v49, %v173_v42  ;;  %vm182_vm5 = vweird.f32 %v2062_v49 }
 0x18a   :  { %2063 = vrsqrt.f32 %v174_v50  ;;  %vm183_vm7 = vmor %vm181_vm6, %vm182_vm5  ;;  %vm191_vm9 = vweird.f32 %v174_v50 }
 0x18b   :  { %v177_v52 = vmul.f32 %v2062_v49, %v176_v51 }
 0x18d   :  { %v178_v53 = vmul.f32 0.5, %v177_v52 }
 0x18f   :  { %v179_v54 = vsub.f32 1.5, %v178_v53 }
 0x190   :  { %v2064_v55 = vpop.eup %2063 }
 0x191   :  { %v180_v56 = vmul.f32 %v2062_v49, %v179_v54  ;;  %v186_v57 = vmul.f32 %v2064_v55, %v174_v50  ;;  %vm192_vm8 = vweird.f32 %v2064_v55 }
 0x192   :  { %vm193_vm10 = vmor %vm191_vm9, %vm192_vm8 }
 0x193   :  { %v187_v58 = vmul.f32 %v2064_v55, %v186_v57  ;;  %v184_v59 = vsel %vm183_vm7, %v2062_v49, %v180_v56 }
 0x194   :  { %v195_v63 = vmul.f32 %v184_v59, %v171_v61 }
 0x195   :  { %v188_v60 = vmul.f32 0.5, %v187_v58 }
 0x196   :  { %v198_v5 = vmul.f32 %v2057_v0, %v195_v63 }
 0x197   :  { %v189_v62 = vsub.f32 1.5, %v188_v60 }
 0x198   :  { %v2305_v8 = vadd.f32 %v2058_v6, %v198_v5 }
 0x199   :  { %v190_v1 = vmul.f32 %v2064_v55, %v189_v62 }
 0x19b   :  { %v194_v3 = vsel %vm193_vm10, %v2064_v55, %v190_v1 }
 0x19c   :  { %v196_v4 = vmul.f32 %v194_v3, %v172_v2 }
 0x19e   :  { %v199_v7 = vmul.f32 %v2057_v0, %v196_v4 }
 0x1a0   :  { %v2307_v9 = vadd.f32 %v2058_v6, %v199_v7 }
 0x1a2   :  { %v230_v10 = vpack.c.bf16 %v2307_v9, %v2305_v8 }
 0x1a4   :  { %1912 = vmatmul.msk.bf16.vlgmr.msra.gmra.mxu1 %vm141_vm3, %v230_v10 }
 0x221   :  { %v256_v13 = vpop.f32.mrf.mxu1 }
 0x222   :  { %v257_v14 = vadd.f32 %v256_v13, %v231_v12 }
 0x224   :  { %v261_v15 = vpack.c.bf16 %v257_v14, %v257_v14 }
 0x226   :  { %v270_v16 = vunpack.c.l.b16 %v261_v15 }
 0x228   :  { %v2318_v17 = vpack.c.b16 %v270_v16, %v270_v16 }
 0x229   :  { %v258_v18 = vpop.f32.mrf.mxu1 }
 0x22a   :  { %v259_v19 = vadd.f32 %v258_v18, %v231_v12  ;;  %388 = vrot.lane.b32.xlu2 %v2318_v17, %s2205_s3  ;;  %272 = vrot.lane.b32.xlu0 %v2318_v17, %s2206_s30 }
 0x22c   :  { %v262_v20 = vpack.c.bf16 %v259_v19, %v259_v19 }
 0x22e   :  { %v295_v21 = vunpack.c.l.b16 %v262_v20 }
 0x230   :  { %v2324_v22 = vpack.c.b16 %v295_v21, %v295_v21 }
 0x232   :  { %297 = vrot.lane.b32.xlu1 %v2324_v22, %s2206_s30  ;;  %386 = vrot.lane.b32.xlu0 %v2318_v17, %s2207_s7 }
 0x23a   :  { %342 = vrot.lane.b32.xlu1 %v2318_v17, %s2200_s26 }
 0x242   :  { %411 = vrot.lane.b32.xlu1 %v2324_v22, %s2205_s3 }
 0x24a   :  { %409 = vrot.lane.b32.xlu1 %v2324_v22, %s2207_s7 }
 0x284   :  { %v389_v25 = vpop.permute.xlu2 %388 }
 0x285   :  { %v394_v28 = vsel %vm274_vm11, %v389_v25, 0 }
 0x29c   :  { %v273_v23 = vpop.permute.xlu0 %272 }
 0x29d   :  { %v279_v24 = vsel %vm274_vm11, %v273_v23, 0 }
 0x29e   :  { %288 = vmatpush.bf16.xpose.msra.mxu2 %v279_v24 }
 0x2a4   :  { %v298_v26 = vpop.permute.xlu1 %297  ;;  %v387_v34 = vpop.permute.xlu0 %386 }
 0x2a5   :  { %1913 = vmatmul.msk.bf16.vlgmr.msra.gmra.mxu2 %vm274_vm11, %v261_v15  ;;  %v303_v27 = vsel %vm274_vm11, %v298_v26, 0 }
 0x2a6   :  { %312 = vmatpush.bf16.xpose.msra.mxu3 %v303_v27 }
 0x2ac   :  { %v343_v29 = vpop.permute.xlu1 %342 }
 0x2ad   :  { %1914 = vmatmul.msk.bf16.vlgmr.msra.gmra.mxu3 %vm274_vm11, %v262_v20  ;;  %v349_v30 = vsel %vm347_vm12, %v343_v29, 0 }
 0x2ae   :  { %403 = vmatpush.bf16.xpose.msrb.mxu3 %v394_v28  ;;  %358 = vmatpush.bf16.msrb.mxu1 %v349_v30 }
 0x2b4   :  { %v412_v31 = vpop.permute.xlu1 %411 }
 0x2b5   :  { %v417_v32 = vsel %vm274_vm11, %v412_v31, 0 }
 0x2b6   :  { %426 = vmatpush.bf16.xpose.msra.mxu1 %v417_v32 }
 0x2bc   :  { %v410_v55 = vpop.permute.xlu1 %409 }
 0x2bd   :  { %1917 = vmatmul.msk.bf16.vlgmr.msrb.gmra.mxu3 %vm274_vm11, %v387_v34 }
 0x328   :  { %v290_v41 = vpop.f32.mrf.mxu2 }
 0x329   :  { %v291_v42 = vadd.f32 %v290_v41, %v2350_v39 }
 0x32b   :  { %v318_v44 = vsel %vm274_vm11, %v291_v42, -inf }
 0x32c   :  { %319 = vmax.xlane.f32.xlu0 %v318_v44 }
 0x330   :  { %v292_v46 = vpop.f32.mrf.mxu2  ;;  %v314_v47 = vpop.f32.mrf.mxu3 }
 0x331   :  { %v315_v48 = vadd.f32 %v314_v47, %v2354_v45 }
 0x333   :  { %v321_v49 = vsel %vm274_vm11, %v315_v48, -inf }
 0x334   :  { %322 = vmax.xlane.f32.xlu1 %v321_v49 }
 0x338   :  { %v316_v50 = vpop.f32.mrf.mxu3 }
 0x340   :  { %v405_v51 = vpop.f32.mrf.mxu3 }
 0x341   :  { %v406_v52 = vadd.f32 %v405_v51, %v2350_v39 }
 0x343   :  { %v432_v53 = vsel %vm274_vm11, %v406_v52, -inf }
 0x344   :  { %433 = vmax.xlane.f32.xlu0 %v432_v53 }
 0x348   :  { %v407_v54 = vpop.f32.mrf.mxu3 }
 0x34d   :  { %539 = vrot.lane.b32.xlu1 %v2318_v17, %s2208_s1 }
 0x355   :  { %477 = vrot.lane.b32.xlu1 %v2324_v22, %s2209_s11 }
 0x358   :  { %364 = vrot.lane.b32.xlu0 %v2324_v22, %s2200_s26 }
 0x35d   :  { %564 = vrot.lane.b32.xlu1 %v2324_v22, %s2210_s12 }
 0x360   :  { %541 = vrot.lane.b32.xlu0 %v2318_v17, %s2210_s12 }
 0x365   :  { %562 = vrot.lane.b32.xlu1 %v2324_v22, %s2208_s1 }
 0x39f   :  { %v320_v56 = vpop.xlane.xlu0 %319 }
 0x3a0   :  { %v324_v57 = vsub.f32 %v291_v42, %v320_v56 }
 0x3a2   :  { %v326_v58 = vmul.f32 1.442695, %v324_v57 }
 0x3a4   :  { %2065 = vpow2.f32 %v326_v58 }
 0x3a7   :  { %v323_v59 = vpop.xlane.xlu1 %322 }
 0x3a8   :  { %v325_v60 = vsub.f32 %v315_v48, %v323_v59 }
 0x3aa   :  { %v2066_v61 = vpop.eup %2065  ;;  %v328_v62 = vmul.f32 1.442695, %v325_v60  ;;  %v214_v60 = vld [vmem:[#allocation2 + $0x14] sm:$0xf] }
 0x3ab   :  { %v330_v63 = vsel %vm274_vm11, %v2066_v61, 0.0 }
 0x3ac   :  { %2067 = vpow2.f32 %v328_v62  ;;  %331 = vadd.xlane.f32.xlu2 %v330_v63 }
 0x3b2   :  { %v2068_v0 = vpop.eup %2067 }
 0x3b3   :  { %v333_v1 = vsel %vm274_vm11, %v2068_v0, 0.0 }
 0x3b4   :  { %334 = vadd.xlane.f32.xlu2 %v333_v1 }
 0x3b7   :  { %v434_v2 = vpop.xlane.xlu0 %433 }
 0x3b8   :  { %v438_v3 = vsub.f32 %v406_v52, %v434_v2 }
 0x3ba   :  { %v440_v4 = vmul.f32 1.442695, %v438_v3 }
 0x3bc   :  { %2069 = vpow2.f32 %v440_v4 }
 0x3bf   :  { %v540_v5 = vpop.permute.xlu1 %539 }
 0x3c2   :  { %v2070_v6 = vpop.eup %2069 }
 0x3c3   :  { %v444_v7 = vsel %vm274_vm11, %v2070_v6, 0.0 }
 0x3c4   :  { %445 = vadd.xlane.f32.xlu2 %v444_v7 }
 0x3c7   :  { %v478_v10 = vpop.permute.xlu1 %477 }
 0x3c8   :  { %v483_v12 = vsel %vm347_vm12, %v478_v10, 0 }
 0x3c9   :  { %492 = vmatpush.bf16.msra.mxu3 %v483_v12 }
 0x3ca   :  { %v365_v13 = vpop.permute.xlu0 %364 }
 0x3cb   :  { %v370_v14 = vsel %vm347_vm12, %v365_v13, 0 }
 0x3cc   :  { %379 = vmatpush.bf16.msrb.mxu2 %v370_v14 }
 0x3cf   :  { %v565_v15 = vpop.permute.xlu1 %564 }
 0x3d0   :  { %v570_v16 = vsel %vm274_vm11, %v565_v15, 0 }
 0x3d1   :  { %579 = vmatpush.bf16.xpose.msrb.mxu3 %v570_v16 }
 0x3d2   :  { %v542_v29 = vpop.permute.xlu0 %541 }
 0x3d3   :  { %v547_v34 = vsel %vm274_vm11, %v542_v29, 0 }
 0x3d7   :  { %v563_v14 = vpop.permute.xlu1 %562 }
 0x3dc   :  { %456 = vrot.lane.b32.xlu2 %v2318_v17, %s2209_s11 }
 0x41f   :  { %v332_v18 = vpop.xlane.xlu2 %331 }
 0x420   :  { %2071 = vrcp.f32 %v332_v18 }
 0x426   :  { %v2072_v19 = vpop.eup %2071 }
 0x427   :  { %v338_v20 = vmul.f32 %v2072_v19, %v2066_v61  ;;  %v335_v21 = vpop.xlane.xlu2 %334  ;;  %v503_v61 = vsel %vm347_vm12, %v214_v60, 0 }
 0x428   :  { %2073 = vrcp.f32 %v335_v21  ;;  %512 = vmatpush.bf16.msrb.mxu0 %v503_v61 }
 0x429   :  { %v340_v23 = vpack.c.bf16 %v338_v20, %v338_v20 }
 0x42b   :  { %1915 = vmatmul.msk.bf16.vlgmr.msrb.gmra.mxu1 %vm274_vm11, %v340_v23 }
 0x42c   :  { %532 = vmatpush.bf16.msrb.mxu1 %v523_v37 }
 0x42e   :  { %v2074_v24 = vpop.eup %2073 }
 0x42f   :  { %v339_v25 = vmul.f32 %v2074_v24, %v2068_v0 }
 0x431   :  { %v341_v26 = vpack.c.bf16 %v339_v25, %v339_v25 }
 0x433   :  { %1916 = vmatmul.msk.bf16.vlgmr.msrb.gmra.mxu2 %vm274_vm11, %v341_v26 }
 0x437   :  { %v446_v27 = vpop.xlane.xlu2 %445 }
 0x438   :  { %2075 = vrcp.f32 %v446_v27 }
 0x43b   :  { %1918 = vmatmul.msk.bf16.vlgmr.msra.gmra.mxu1 %vm274_vm11, %v410_v55 }
 0x43e   :  { %v2076_v28 = vpop.eup %2075 }
 0x43f   :  { %v452_v30 = vmul.f32 %v2076_v28, %v2070_v6  ;;  %v457_v31 = vpop.permute.xlu2 %456 }
 0x440   :  { %v462_v32 = vsel %vm347_vm12, %v457_v31, 0 }
 0x441   :  { %v454_v35 = vpack.c.bf16 %v452_v30, %v452_v30  ;;  %471 = vmatpush.bf16.msra.mxu2 %v462_v32 }
 0x444   :  { %1919 = vmatmul.msk.bf16.vlgmr.msra.gmra.mxu2 %vm274_vm11, %v454_v35 }
 0x445   :  { %556 = vmatpush.bf16.xpose.msrb.mxu2 %v547_v34 }
 0x454   :  { %1923 = vmatmul.msk.bf16.vlgmr.msrb.gmra.mxu2 %vm274_vm11, %v540_v5 }
 0x4a8   :  { %v360_v38 = vpop.f32.mrf.mxu1 }
 0x4b0   :  { %v362_v40 = vpop.f32.mrf.mxu1 }
 0x4b6   :  { %v381_v41 = vpop.f32.mrf.mxu2 }
 0x4b7   :  { %v385_v42 = vpack.c.bf16 %v381_v41, %v360_v38 }
 0x4b8   :  { %v428_v43 = vpop.f32.mrf.mxu1 }
 0x4b9   :  { %v429_v44 = vadd.f32 %v428_v43, %v2354_v45  ;;  %1922 = vmatmul.msk.bf16.vlgmr.msrb.gmra.mxu1 %vm274_vm11, %v385_v42 }
 0x4bb   :  { %v435_v46 = vsel %vm274_vm11, %v429_v44, -inf }
 0x4bc   :  { %436 = vmax.xlane.f32.xlu0 %v435_v46 }
 0x4be   :  { %v383_v47 = vpop.f32.mrf.mxu2 }
 0x4c0   :  { %v430_v48 = vpop.f32.mrf.mxu1 }
 0x4c7   :  { %v473_v49 = vpop.f32.mrf.mxu2 }
 0x4cf   :  { %v475_v50 = vpop.f32.mrf.mxu2 }
 0x4d7   :  { %v558_v51 = vpop.f32.mrf.mxu2 }
 0x4d8   :  { %v559_v52 = vadd.f32 %v558_v51, %v2350_v39 }
 0x4da   :  { %v585_v53 = vsel %vm274_vm11, %v559_v52, -inf }
 0x4db   :  { %586 = vmax.xlane.f32.xlu0 %v585_v53 }
 0x4df   :  { %v560_v54 = vpop.f32.mrf.mxu2 }
 0x4ef   :  { %609 = vrot.lane.b32.xlu0 %v2318_v17, %s2211_s13 }
 0x4f7   :  { %699 = vrot.lane.b32.xlu0 %v2324_v22, %s2212_s14 }
 0x4ff   :  { %697 = vrot.lane.b32.xlu0 %v2324_v22, %s2213_s15 }
 0x52f   :  { %v437_v55 = vpop.xlane.xlu0 %436 }
 0x530   :  { %v439_v56 = vsub.f32 %v429_v44, %v437_v55 }
 0x532   :  { %v442_v57 = vmul.f32 1.442695, %v439_v56 }
 0x534   :  { %2077 = vpow2.f32 %v442_v57 }
 0x53a   :  { %v2078_v58 = vpop.eup %2077 }
 0x53b   :  { %v447_v59 = vsel %vm274_vm11, %v2078_v58, 0.0 }
 0x53c   :  { %448 = vadd.xlane.f32.xlu2 %v447_v59 }
 0x54e   :  { %v587_v62 = vpop.xlane.xlu0 %586 }
 0x54f   :  { %v591_v63 = vsub.f32 %v559_v52, %v587_v62 }
 0x551   :  { %v593_v0 = vmul.f32 1.442695, %v591_v63 }
 0x553   :  { %2079 = vpow2.f32 %v593_v0 }
 0x554   :  { %676 = vrot.lane.b32.xlu2 %v2318_v17, %s2212_s14 }
 0x559   :  { %v2080_v1 = vpop.eup %2079 }
 0x55a   :  { %v597_v2 = vsel %vm274_vm11, %v2080_v1, 0.0 }
 0x55b   :  { %598 = vadd.xlane.f32.xlu1 %v597_v2 }
 0x55c   :  { %674 = vrot.lane.b32.xlu2 %v2318_v17, %s2213_s15 }
 0x561   :  { %v610_v3 = vpop.permute.xlu0 %609 }
 0x562   :  { %v615_v4 = vsel %vm347_vm12, %v610_v3, 0 }
 0x563   :  { %624 = vmatpush.bf16.msra.mxu0 %v615_v4 }
 0x569   :  { %v700_v20 = vpop.permute.xlu0 %699 }
 0x56a   :  { %v705_v24 = vsel %vm274_vm11, %v700_v20, 0 }
 0x571   :  { %v698_v36 = vpop.permute.xlu0 %697 }
 0x574   :  { %630 = vrot.lane.b32.xlu1 %v2324_v22, %s2211_s13 }
 0x5af   :  { %v449_v5 = vpop.xlane.xlu2 %448 }
 0x5b0   :  { %2081 = vrcp.f32 %v449_v5 }
 0x5b6   :  { %v2082_v6 = vpop.eup %2081 }
 0x5b7   :  { %v453_v7 = vmul.f32 %v2082_v6, %v2078_v58  ;;  %v677_v10 = vpop.permute.xlu2 %676 }
 0x5b8   :  { %v682_v13 = vsel %vm274_vm11, %v677_v10, 0 }
 0x5b9   :  { %v455_v12 = vpack.c.bf16 %v453_v7, %v453_v7 }
 0x5bb   :  { %1920 = vmatmul.msk.bf16.vlgmr.msra.gmra.mxu3 %vm274_vm11, %v455_v12  ;;  %v215_v12 = vld [vmem:[#allocation2 + $0x18] sm:$0xf] }
 0x5bc   :  { %691 = vmatpush.bf16.xpose.msra.mxu3 %v682_v13  ;;  %v656_v13 = vsel %vm347_vm12, %v215_v12, 0 }
 0x5bd   :  { %665 = vmatpush.bf16.msra.mxu2 %v656_v13 }
 0x5bf   :  { %v675_v15 = vpop.permute.xlu2 %674 }
 0x5cb   :  { %1924 = vmatmul.msk.bf16.vlgmr.msrb.gmra.mxu3 %vm274_vm11, %v563_v14  ;;  %v534_v14 = vpop.f32.mrf.mxu1 }
 0x5ce   :  { %v599_v16 = vpop.xlane.xlu1 %598 }
 0x5cf   :  { %2083 = vrcp.f32 %v599_v16 }
 0x5d5   :  { %v2084_v26 = vpop.eup %2083 }
 0x5d6   :  { %v605_v27 = vmul.f32 %v2084_v26, %v2080_v1 }
 0x5d8   :  { %v607_v29 = vpack.c.bf16 %v605_v27, %v605_v27 }
 0x5db   :  { %1928 = vmatmul.msk.bf16.vlgmr.msra.gmra.mxu3 %vm274_vm11, %v675_v15  ;;  %v536_v15 = vpop.f32.mrf.mxu1 }
 0x5e6   :  { %v631_v18 = vpop.permute.xlu1 %630 }
 0x5e7   :  { %v636_v19 = vsel %vm347_vm12, %v631_v18, 0 }
 0x5e8   :  { %645 = vmatpush.bf16.msra.mxu1 %v636_v19 }
 0x63e   :  { %v494_v21 = vpop.f32.mrf.mxu3 }
 0x63f   :  { %v498_v23 = vpack.c.bf16 %v494_v21, %v473_v49 }
 0x641   :  { %1921 = vmatmul.msk.bf16.vlgmr.msrb.gmra.mxu0 %vm274_vm11, %v498_v23 }
 0x642   :  { %714 = vmatpush.bf16.xpose.msrb.mxu0 %v705_v24 }
 0x646   :  { %v496_v25 = vpop.f32.mrf.mxu3 }
 0x64e   :  { %v581_v28 = vpop.f32.mrf.mxu3 }
 0x64f   :  { %v582_v30 = vadd.f32 %v581_v28, %v2354_v45  ;;  %v216_v28 = vld [vmem:[#allocation2 + $0x1c] sm:$0xf] }
 0x651   :  { %1925 = vmatmul.msk.bf16.vlgmr.msra.gmra.mxu0 %vm274_vm11, %v607_v29  ;;  %v588_v31 = vsel %vm274_vm11, %v582_v30, -inf  ;;  %v791_v29 = vsel %vm347_vm12, %v216_v28, 0 }
 0x652   :  { %589 = vmax.xlane.f32.xlu2 %v588_v31  ;;  %800 = vmatpush.bf16.msrb.mxu3 %v791_v29 }
 0x656   :  { %v583_v32 = vpop.f32.mrf.mxu3 }
 0x65e   :  { %v693_v34 = vpop.f32.mrf.mxu3 }
 0x65f   :  { %v694_v35 = vadd.f32 %v693_v34, %v2350_v39 }
 0x661   :  { %1929 = vmatmul.msk.bf16.vlgmr.msrb.gmra.mxu0 %vm274_vm11, %v698_v36  ;;  %v720_v37 = vsel %vm274_vm11, %v694_v35, -inf }
 0x662   :  { %721 = vmax.xlane.f32.xlu2 %v720_v37 }
 0x666   :  { %v695_v38 = vpop.f32.mrf.mxu3 }
 0x6be   :  { %v2422_v40 = vpop.f32.mrf.mxu0 }
 0x6c5   :  { %v590_v41 = vpop.xlane.xlu2 %589 }
 0x6c6   :  { %v592_v42 = vsub.f32 %v582_v30, %v590_v41  ;;  %v2424_v43 = vpop.f32.mrf.mxu0  ;;  %v535_v30 = vadd.f32 %v534_v14, %v2422_v40 }
 0x6c7   :  { %v537_v34 = vadd.f32 %v536_v15, %v2424_v43 }
 0x6c8   :  { %v595_v44 = vmul.f32 1.442695, %v592_v42 }
 0x6ca   :  { %2085 = vpow2.f32 %v595_v44 }
 0x6ce   :  { %v626_v46 = vpop.f32.mrf.mxu0 }
 0x6d0   :  { %v2086_v47 = vpop.eup %2085 }
 0x6d1   :  { %v600_v48 = vsel %vm274_vm11, %v2086_v47, 0.0 }
 0x6d2   :  { %601 = vadd.xlane.f32.xlu0 %v600_v48 }
 0x6d5   :  { %v722_v49 = vpop.xlane.xlu2 %721 }
 0x6d6   :  { %v726_v50 = vsub.f32 %v694_v35, %v722_v49  ;;  %v628_v51 = vpop.f32.mrf.mxu0 }
 0x6d8   :  { %v728_v52 = vmul.f32 1.442695, %v726_v50 }
 0x6da   :  { %2087 = vpow2.f32 %v728_v52 }
 0x6de   :  { %v716_v53 = vpop.f32.mrf.mxu0 }
 0x6df   :  { %v717_v54 = vadd.f32 %v716_v53, %v2354_v45 }
 0x6e0   :  { %v2088_v55 = vpop.eup %2087 }
 0x6e1   :  { %v732_v56 = vsel %vm274_vm11, %v2088_v55, 0.0  ;;  %v723_v57 = vsel %vm274_vm11, %v717_v54, -inf }
 0x6e2   :  { %733 = vadd.xlane.f32.xlu2 %v732_v56  ;;  %724 = vmax.xlane.f32.xlu1 %v723_v57  ;;  %v2026_v57 = vld [vmem:[#allocation2 + $0x28] sm:$0xff] }
 0x6e3   :  { %891 = vmatpush.bf16.msra.mxu0 %v2026_v57 }
 0x6e6   :  { %v718_v58 = vpop.f32.mrf.mxu0 }
 0x6fa   :  { %744 = vrot.lane.b32.xlu2 %v2318_v17, %s2214_s16 }
 0x745   :  { %v602_v59 = vpop.xlane.xlu0 %601 }
 0x746   :  { %2089 = vrcp.f32 %v602_v59  ;;  %v2025_v59 = vld [vmem:[#allocation2 + $0x20] sm:$0xff] }
 0x747   :  { %892 = vmatpush.bf16.msra.mxu0 %v2025_v59 }
 0x74c   :  { %v2090_v60 = vpop.eup %2089 }
 0x74d   :  { %v606_v61 = vmul.f32 %v2090_v60, %v2086_v47 }
 0x74f   :  { %v608_v62 = vpack.c.bf16 %v606_v61, %v606_v61 }
 0x751   :  { %1926 = vmatmul.msk.bf16.vlgmr.msra.gmra.mxu1 %vm274_vm11, %v608_v62 }
 0x755   :  { %v734_v63 = vpop.xlane.xlu2 %733  ;;  %v725_v0 = vpop.xlane.xlu1 %724 }
 0x756   :  { %2091 = vrcp.f32 %v734_v63  ;;  %v727_v1 = vsub.f32 %v717_v54, %v725_v0 }
 0x758   :  { %v730_v2 = vmul.f32 1.442695, %v727_v1 }
 0x75a   :  { %2093 = vpow2.f32 %v730_v2 }
 0x75c   :  { %v2092_v3 = vpop.eup %2091 }
 0x75d   :  { %v740_v4 = vmul.f32 %v2092_v3, %v2088_v55  ;;  %v745_v5 = vpop.permute.xlu2 %744 }
 0x75e   :  { %v750_v6 = vsel %vm347_vm12, %v745_v5, 0 }
 0x75f   :  { %v742_v7 = vpack.c.bf16 %v740_v4, %v740_v4  ;;  %759 = vmatpush.bf16.msrb.mxu1 %v750_v6 }
 0x760   :  { %v2094_v17 = vpop.eup %2093 }
 0x761   :  { %v735_v10 = vsel %vm274_vm11, %v2094_v17, 0.0 }
 0x762   :  { %736 = vadd.xlane.f32.xlu0 %v735_v10  ;;  %1930 = vmatmul.msk.bf16.vlgmr.msrb.gmra.mxu1 %vm274_vm11, %v742_v7 }
 0x776   :  { %765 = vrot.lane.b32.xlu0 %v2324_v22, %s2214_s16 }
 0x7ce   :  { %v647_v16 = vpop.f32.mrf.mxu1 }
 0x7cf   :  { %v651_v18 = vpack.c.bf16 %v647_v16, %v626_v46  ;;  %v811_v46 = vperm.slane %v2315_v11, 1 }
 0x7d1   :  { %1927 = vmatmul.msk.bf16.vlgmr.msra.gmra.mxu2 %vm274_vm11, %v651_v18 }
 0x7d5   :  { %v737_v20 = vpop.xlane.xlu0 %736 }
 0x7d6   :  { %v649_v19 = vpop.f32.mrf.mxu1  ;;  %2095 = vrcp.f32 %v737_v20 }
 0x7dc   :  { %v2096_v23 = vpop.eup %2095 }
 0x7dd   :  { %v741_v24 = vmul.f32 %v2096_v23, %v2094_v17  ;;  %v862_v23 = vperm.slane %v2315_v11, 2 }
 0x7df   :  { %v761_v21 = vpop.f32.mrf.mxu1  ;;  %v743_v27 = vpack.c.bf16 %v741_v24, %v741_v24 }
 0x7e7   :  { %v763_v25 = vpop.f32.mrf.mxu1 }
 0x7e8   :  { %v766_v26 = vpop.permute.xlu0 %765 }
 0x7e9   :  { %v771_v22 = vsel %vm347_vm12, %v766_v26, 0 }
 0x7ea   :  { %780 = vmatpush.bf16.msrb.mxu2 %v771_v22 }
 0x7ed   :  { %1931 = vmatmul.msk.bf16.vlgmr.msrb.gmra.mxu2 %vm274_vm11, %v743_v27 }
 0x854   :  { %v667_v31 = vpop.f32.mrf.mxu2 }
 0x855   :  { %v672_v32 = vadd.f32 %v667_v31, %v535_v30  ;;  %v865_v30 = vperm.slane %v2315_v11, 3 }
 0x85c   :  { %v669_v35 = vpop.f32.mrf.mxu2 }
 0x85d   :  { %v673_v36 = vadd.f32 %v669_v35, %v537_v34 }
 0x870   :  { %v782_v37 = vpop.f32.mrf.mxu2 }
 0x871   :  { %v786_v38 = vpack.c.bf16 %v782_v37, %v761_v21  ;;  %v2029_v37 = vld [vmem:[#allocation2 + $0x40] sm:$0xff] }
 0x873   :  { %1932 = vmatmul.msk.bf16.vlgmr.msrb.gmra.mxu3 %vm274_vm11, %v786_v38  ;;  %v2028_v38 = vld [vmem:[#allocation2 + $0x38] sm:$0xff] }
 0x878   :  { %v784_v41 = vpop.f32.mrf.mxu2 }
 0x879   :  { %v869_v41 = vperm.slane %v2315_v11, 4 }
 0x8f6   :  { %v802_v42 = vpop.f32.mrf.mxu3 }
 0x8f7   :  { %v807_v44 = vadd.f32 %v802_v42, %v672_v32 }
 0x8f9   :  { %v809_v47 = vadd.f32 %v807_v44, %v2305_v8  ;;  %v2027_v44 = vld [vmem:[#allocation2 + $0x30] sm:$0xff] }
 0x8fb   :  { %v812_v48 = vadd.f32 %v811_v46, %v809_v47 }
 0x8fd   :  { %v814_v40 = vsel %vm141_vm3, %v812_v48, 0.0  ;;  %v822_v51 = vmul.f32 %v812_v48, %v812_v48 }
 0x8fe   :  { %815 = vadd.xlane.f32.xlu1 %v814_v40  ;;  %v804_v49 = vpop.f32.mrf.mxu3 }
 0x8ff   :  { %v808_v50 = vadd.f32 %v804_v49, %v673_v36  ;;  %v824_v53 = vsel %vm141_vm3, %v822_v51, 0.0  ;;  %v2030_v36 = vld [vmem:[#allocation2 + $0x48] sm:$0xff] }
 0x900   :  { %951 = vmatpush.bf16.msra.mxu1 %v2030_v36 }
 0x901   :  { %v810_v43 = vadd.f32 %v808_v50, %v2307_v9 }
 0x903   :  { %v813_v52 = vadd.f32 %v811_v46, %v810_v43 }
 0x904   :  { %952 = vmatpush.bf16.msra.mxu1 %v2029_v37 }
 0x905   :  { %v817_v54 = vsel %vm141_vm3, %v813_v52, 0.0  ;;  %v823_v55 = vmul.f32 %v813_v52, %v813_v52 }
 0x906   :  { %825 = vadd.xlane.f32.xlu1 %v824_v53  ;;  %818 = vadd.xlane.f32.xlu0 %v817_v54 }
 0x907   :  { %v827_v56 = vsel %vm141_vm3, %v823_v55, 0.0 }
 0x908   :  { %828 = vadd.xlane.f32.xlu2 %v827_v56  ;;  %953 = vmatpush.bf16.msra.mxu1 %v2028_v38 }
 0x90c   :  { %954 = vmatpush.bf16.msra.mxu1 %v2027_v44 }
 0x971   :  { %v816_v8 = vpop.xlane.xlu1 %815 }
 0x972   :  { %v820_v58 = vmul.f32 %v816_v8, %v2293_v33 }
 0x974   :  { %v832_v61 = vmul.f32 %v820_v58, %v820_v58  ;;  %v836_v21 = vsub.f32 %v812_v48, %v820_v58 }
 0x979   :  { %v826_v60 = vpop.xlane.xlu1 %825  ;;  %v819_v9 = vpop.xlane.xlu0 %818 }
 0x97a   :  { %v830_v62 = vmul.f32 %v826_v60, %v2293_v33  ;;  %v821_v63 = vmul.f32 %v819_v9, %v2293_v33 }
 0x97b   :  { %v829_v0 = vpop.xlane.xlu2 %828 }
 0x97c   :  { %v834_v1 = vsub.f32 %v830_v62, %v832_v61  ;;  %v833_v2 = vmul.f32 %v821_v63, %v821_v63  ;;  %v831_v3 = vmul.f32 %v829_v0, %v2293_v33  ;;  %v837_v22 = vsub.f32 %v813_v52, %v821_v63 }
 0x97d   :  { %v918_v0 = vperm.slane %v2315_v11, 5 }
 0x97e   :  { %v838_v4 = vadd.f32 1e-12, %v834_v1  ;;  %v835_v5 = vsub.f32 %v831_v3, %v833_v2 }
 0x980   :  { %2097 = vrsqrt.f32 %v838_v4  ;;  %v839_v6 = vadd.f32 1e-12, %v835_v5  ;;  %vm846_vm14 = vweird.f32 %v838_v4 }
 0x982   :  { %2099 = vrsqrt.f32 %v839_v6  ;;  %vm856_vm1 = vweird.f32 %v839_v6 }
 0x986   :  { %v2098_v7 = vpop.eup %2097 }
 0x987   :  { %v841_v17 = vmul.f32 %v2098_v7, %v838_v4  ;;  %vm847_vm13 = vweird.f32 %v2098_v7 }
 0x988   :  { %v2100_v10 = vpop.eup %2099  ;;  %vm848_vm0 = vmor %vm846_vm14, %vm847_vm13  ;;  %vm1308_vm13 = vcmask 1041409  }
 0x989   :  { %v842_v12 = vmul.f32 %v2098_v7, %v841_v17  ;;  %v851_v13 = vmul.f32 %v2100_v10, %v839_v6  ;;  %vm857_vm15 = vweird.f32 %v2100_v10 }
 0x98a   :  { %vm858_vm2 = vmor %vm856_vm1, %vm857_vm15 }
 0x98b   :  { %v843_v14 = vmul.f32 0.5, %v842_v12  ;;  %v852_v15 = vmul.f32 %v2100_v10, %v851_v13 }
 0x98d   :  { %v844_v16 = vsub.f32 1.5, %v843_v14  ;;  %v853_v18 = vmul.f32 0.5, %v852_v15 }
 0x98f   :  { %v845_v19 = vmul.f32 %v2098_v7, %v844_v16  ;;  %v854_v20 = vsub.f32 1.5, %v853_v18 }
 0x991   :  { %v849_v24 = vsel %vm848_vm0, %v2098_v7, %v845_v19  ;;  %v855_v25 = vmul.f32 %v2100_v10, %v854_v20 }
 0x992   :  { %v860_v26 = vmul.f32 %v849_v24, %v836_v21 }
 0x993   :  { %v859_v27 = vsel %vm858_vm2, %v2100_v10, %v855_v25  ;;  %v2032_v25 = vld [vmem:[#allocation2 + $0x58] sm:$0xff] }
 0x994   :  { %v863_v28 = vmul.f32 %v862_v23, %v860_v26  ;;  %v861_v29 = vmul.f32 %v859_v27, %v837_v22  ;;  %1063 = vmatpush.bf16.msra.mxu2 %v2032_v25  ;;  %v2031_v26 = vld [vmem:[#allocation2 + $0x50] sm:$0xff] }
 0x996   :  { %v864_v31 = vmul.f32 %v862_v23, %v861_v29  ;;  %v866_v32 = vadd.f32 %v865_v30, %v863_v28 }
 0x998   :  { %v867_v34 = vadd.f32 %v865_v30, %v864_v31  ;;  %1064 = vmatpush.bf16.msra.mxu2 %v2031_v26 }
 0x99a   :  { %v868_v35 = vpack.c.bf16 %v867_v34, %v866_v32 }
 0x99c   :  { %1941 = vmatmul.msk.bf16.vlgmr.msra.gmra.mxu0 %vm141_vm3, %v868_v35 }
 0xa19   :  { %v894_v42 = vpop.f32.mrf.mxu0 }
 0xa1a   :  { %v895_v46 = vadd.f32 %v894_v42, %v869_v41 }
 0xa1c   :  { %v899_v47 = vmul.f32 %v895_v46, %v895_v46 }
 0xa1e   :  { %v901_v48 = vmul.f32 %v899_v47, %v895_v46 }
 0xa20   :  { %v903_v40 = vmul.f32 0.044715, %v901_v48 }
 0xa21   :  { %v896_v49 = vpop.f32.mrf.mxu0 }
 0xa22   :  { %v905_v50 = vadd.f32 %v903_v40, %v895_v46  ;;  %v897_v43 = vadd.f32 %v896_v49, %v869_v41  ;;  %v1011_v49 = vperm.slane %v2315_v11, 6 }
 0xa24   :  { %v907_v51 = vmul.f32 0.7978846, %v905_v50  ;;  %v900_v52 = vmul.f32 %v897_v43, %v897_v43 }
 0xa26   :  { %v902_v53 = vmul.f32 %v900_v52, %v897_v43  ;;  %2101 = vtanh.f32 %v907_v51 }
 0xa28   :  { %v904_v54 = vmul.f32 0.044715, %v902_v53 }
 0xa2a   :  { %v906_v55 = vadd.f32 %v904_v54, %v897_v43 }
 0xa2c   :  { %v908_v56 = vmul.f32 0.7978846, %v906_v55  ;;  %v2102_v8 = vpop.eup %2101  ;;  %v1014_v55 = vperm.slane %v2315_v11, 7 }
 0xa2d   :  { %v911_v57 = vadd.f32 1.0, %v2102_v8 }
 0xa2e   :  { %2103 = vtanh.f32 %v908_v56 }
 0xa2f   :  { %v913_v59 = vmul.f32 0.5, %v911_v57 }
 0xa31   :  { %v915_v61 = vmul.f32 %v913_v59, %v895_v46  ;;  %v2483_v59 = vld [vmem:[%s2642_s5 + $0x8] sm:$0xff]  ;;  %s2215_s5 = smov [#allocation5]  }
 0xa34   :  { %v2104_v58 = vpop.eup %2103 }
 0xa35   :  { %v912_v60 = vadd.f32 1.0, %v2104_v58 }
 0xa37   :  { %v914_v9 = vmul.f32 0.5, %v912_v60  ;;  %v1041_v60 = vperm.slane %v2483_v59, 0 }
 0xa39   :  { %v916_v62 = vmul.f32 %v914_v9, %v897_v43 }
 0xa3b   :  { %v917_v63 = vpack.c.bf16 %v916_v62, %v915_v61 }
 0xa3d   :  { %1958 = vmatmul.msk.bf16.vlgmr.msra.gmra.mxu1 %vm943_vm4, %v917_v63 }
 0xaba   :  { %v956_v1 = vpop.f32.mrf.mxu1 }
 0xabb   :  { %v957_v2 = vadd.f32 %v956_v1, %v918_v0 }
 0xabd   :  { %v961_v3 = vadd.f32 %v957_v2, %v866_v32 }
 0xabf   :  { %v963_v4 = vsel %vm141_vm3, %v961_v3, 0.0  ;;  %v971_v5 = vmul.f32 %v961_v3, %v961_v3 }
 0xac0   :  { %964 = vadd.xlane.f32.xlu1 %v963_v4 }
 0xac1   :  { %v973_v17 = vsel %vm141_vm3, %v971_v5, 0.0 }
 0xac2   :  { %v958_v6 = vpop.f32.mrf.mxu1 }
 0xac3   :  { %v959_v7 = vadd.f32 %v958_v6, %v918_v0 }
 0xac5   :  { %v962_v10 = vadd.f32 %v959_v7, %v867_v34 }
 0xac7   :  { %v966_v12 = vsel %vm141_vm3, %v962_v10, 0.0  ;;  %v972_v13 = vmul.f32 %v962_v10, %v962_v10 }
 0xac8   :  { %974 = vadd.xlane.f32.xlu1 %v973_v17 }
 0xac9   :  { %v976_v14 = vsel %vm141_vm3, %v972_v13, 0.0 }
 0xad0   :  { %967 = vadd.xlane.f32.xlu1 %v966_v12 }
 0xad8   :  { %977 = vadd.xlane.f32.xlu1 %v976_v14 }
 0xb33   :  { %v965_v15 = vpop.xlane.xlu1 %964 }
 0xb34   :  { %v969_v16 = vmul.f32 %v965_v15, %v2293_v33 }
 0xb36   :  { %v981_v19 = vmul.f32 %v969_v16, %v969_v16  ;;  %v985_v48 = vsub.f32 %v961_v3, %v969_v16 }
 0xb3b   :  { %v975_v18 = vpop.xlane.xlu1 %974 }
 0xb3c   :  { %v979_v20 = vmul.f32 %v975_v18, %v2293_v33 }
 0xb3e   :  { %v983_v21 = vsub.f32 %v979_v20, %v981_v19 }
 0xb40   :  { %v987_v23 = vadd.f32 1e-12, %v983_v21 }
 0xb42   :  { %2105 = vrsqrt.f32 %v987_v23  ;;  %vm995_vm6 = vweird.f32 %v987_v23 }
 0xb43   :  { %v968_v24 = vpop.xlane.xlu1 %967 }
 0xb44   :  { %v970_v27 = vmul.f32 %v968_v24, %v2293_v33 }
 0xb46   :  { %v982_v30 = vmul.f32 %v970_v27, %v970_v27  ;;  %v986_v51 = vsub.f32 %v962_v10, %v970_v27 }
 0xb48   :  { %v2106_v22 = vpop.eup %2105 }
 0xb49   :  { %v990_v28 = vmul.f32 %v2106_v22, %v987_v23  ;;  %vm996_vm5 = vweird.f32 %v2106_v22 }
 0xb4a   :  { %vm997_vm7 = vmor %vm995_vm6, %vm996_vm5 }
 0xb4b   :  { %v978_v29 = vpop.xlane.xlu1 %977  ;;  %v991_v32 = vmul.f32 %v2106_v22, %v990_v28 }
 0xb4c   :  { %v980_v31 = vmul.f32 %v978_v29, %v2293_v33 }
 0xb4d   :  { %v992_v36 = vmul.f32 0.5, %v991_v32 }
 0xb4e   :  { %v984_v34 = vsub.f32 %v980_v31, %v982_v30 }
 0xb4f   :  { %v993_v37 = vsub.f32 1.5, %v992_v36 }
 0xb50   :  { %v988_v35 = vadd.f32 1e-12, %v984_v34 }
 0xb51   :  { %v994_v41 = vmul.f32 %v2106_v22, %v993_v37 }
 0xb52   :  { %2107 = vrsqrt.f32 %v988_v35  ;;  %vm1005_vm9 = vweird.f32 %v988_v35 }
 0xb53   :  { %v998_v46 = vsel %vm997_vm7, %v2106_v22, %v994_v41 }
 0xb54   :  { %v1009_v50 = vmul.f32 %v998_v46, %v985_v48 }
 0xb56   :  { %v1012_v53 = vmul.f32 %v1011_v49, %v1009_v50 }
 0xb58   :  { %v2108_v38 = vpop.eup %2107  ;;  %v2473_v8 = vadd.f32 %v1014_v55, %v1012_v53 }
 0xb59   :  { %v1000_v42 = vmul.f32 %v2108_v38, %v988_v35  ;;  %vm1006_vm8 = vweird.f32 %v2108_v38 }
 0xb5a   :  { %vm1007_vm10 = vmor %vm1005_vm9, %vm1006_vm8 }
 0xb5b   :  { %v1001_v44 = vmul.f32 %v2108_v38, %v1000_v42 }
 0xb5d   :  { %v1002_v47 = vmul.f32 0.5, %v1001_v44 }
 0xb5f   :  { %v1003_v40 = vsub.f32 1.5, %v1002_v47 }
 0xb61   :  { %v1004_v43 = vmul.f32 %v2108_v38, %v1003_v40 }
 0xb63   :  { %v1008_v52 = vsel %vm1007_vm10, %v2108_v38, %v1004_v43 }
 0xb64   :  { %v1010_v54 = vmul.f32 %v1008_v52, %v986_v51 }
 0xb66   :  { %v1013_v56 = vmul.f32 %v1011_v49, %v1010_v54 }
 0xb68   :  { %v2475_v57 = vadd.f32 %v1014_v55, %v1013_v56 }
 0xb6a   :  { %v1040_v58 = vpack.c.bf16 %v2475_v57, %v2473_v8 }
 0xb6c   :  { %1968 = vmatmul.msk.bf16.vlgmr.msra.gmra.mxu2 %vm141_vm3, %v1040_v58 }
 0xbef   :  { %v1066_v9 = vpop.f32.mrf.mxu2 }
 0xbf0   :  { %v1067_v61 = vadd.f32 %v1066_v9, %v1041_v60 }
 0xbf2   :  { %v1071_v11 = vpack.c.bf16 %v1067_v61, %v1067_v61 }
 0xbf4   :  { %v1074_v62 = vunpack.c.l.b16 %v1071_v11 }
 0xbf6   :  { %v2486_v63 = vpack.c.b16 %v1074_v62, %v1074_v62 }
 0xbf7   :  { %v1068_v0 = vpop.f32.mrf.mxu2 }
 0xbf8   :  { %v1069_v1 = vadd.f32 %v1068_v0, %v1041_v60  ;;  %1189 = vrot.lane.b32.xlu2 %v2486_v63, %s2207_s7  ;;  %1191 = vrot.lane.b32.xlu1 %v2486_v63, %s2205_s3 }
 0xbf9   :  { %1076 = vrot.lane.b32.xlu0 %v2486_v63, %s2206_s30 }
 0xbfa   :  { %v1072_v2 = vpack.c.bf16 %v1069_v1, %v1069_v1 }
 0xbfc   :  { %v1098_v3 = vunpack.c.l.b16 %v1072_v2 }
 0xbfe   :  { %v2494_v4 = vpack.c.b16 %v1098_v3, %v1098_v3 }
 0xc00   :  { %1212 = vrot.lane.b32.xlu1 %v2494_v4, %s2207_s7 }
 0xc01   :  { %1100 = vrot.lane.b32.xlu0 %v2494_v4, %s2206_s30 }
 0xc09   :  { %1214 = vrot.lane.b32.xlu0 %v2494_v4, %s2205_s3 }
 0xc52   :  { %v1190_v15 = vpop.permute.xlu2 %1189 }
 0xc6a   :  { %v1192_v5 = vpop.permute.xlu1 %1191 }
 0xc6b   :  { %v1197_v6 = vsel %vm274_vm11, %v1192_v5, 0  ;;  %v1077_v7 = vpop.permute.xlu0 %1076 }
 0xc6c   :  { %v1082_v17 = vsel %vm274_vm11, %v1077_v7, 0  ;;  %v1023_v7 = vld [vmem:[#allocation2 + $0x64] sm:$0xf] }
 0xc6d   :  { %1091 = vmatpush.bf16.xpose.msra.mxu3 %v1082_v17 }
 0xc72   :  { %v1213_v16 = vpop.permute.xlu1 %1212 }
 0xc73   :  { %v1101_v10 = vpop.permute.xlu0 %1100 }
 0xc74   :  { %v1106_v12 = vsel %vm274_vm11, %v1101_v10, 0  ;;  %1969 = vmatmul.msk.bf16.vlgmr.msra.gmra.mxu3 %vm274_vm11, %v1071_v11  ;;  %v1315_v10 = vsel %vm347_vm12, %v1023_v7, 0 }
 0xc75   :  { %1206 = vmatpush.bf16.xpose.msrb.mxu3 %v1197_v6  ;;  %1115 = vmatpush.bf16.xpose.msrb.mxu0 %v1106_v12 }
 0xc7b   :  { %v1215_v13 = vpop.permute.xlu0 %1214 }
 0xc7c   :  { %v1220_v14 = vsel %vm274_vm11, %v1215_v13, 0  ;;  %1970 = vmatmul.msk.bf16.vlgmr.msrb.gmra.mxu0 %vm274_vm11, %v1072_v2 }
 0xc7d   :  { %1229 = vmatpush.bf16.xpose.msra.mxu0 %v1220_v14  ;;  %1324 = vmatpush.bf16.msra.mxu3 %v1315_v10 }
 0xc84   :  { %1973 = vmatmul.msk.bf16.vlgmr.msrb.gmra.mxu3 %vm274_vm11, %v1190_v15 }
 0xc8c   :  { %1974 = vmatmul.msk.bf16.vlgmr.msra.gmra.mxu0 %vm274_vm11, %v1213_v16 }
 0xcf7   :  { %v1093_v18 = vpop.f32.mrf.mxu3 }
 0xcf8   :  { %v1094_v19 = vadd.f32 %v1093_v18, %v2350_v39 }
 0xcf9   :  { %v1117_v20 = vpop.f32.mrf.mxu0 }
 0xcfa   :  { %v1121_v21 = vsel %vm274_vm11, %v1094_v19, -inf  ;;  %v1118_v30 = vadd.f32 %v1117_v20, %v2354_v45 }
 0xcfb   :  { %1122 = vmax.xlane.f32.xlu2 %v1121_v21 }
 0xcfc   :  { %v1124_v31 = vsel %vm274_vm11, %v1118_v30, -inf }
 0xcff   :  { %v1095_v23 = vpop.f32.mrf.mxu3 }
 0xd01   :  { %v1119_v24 = vpop.f32.mrf.mxu0 }
 0xd07   :  { %v1208_v25 = vpop.f32.mrf.mxu3 }
 0xd08   :  { %v1209_v26 = vadd.f32 %v1208_v25, %v2350_v39 }
 0xd09   :  { %v1231_v22 = vpop.f32.mrf.mxu0 }
 0xd0a   :  { %v1235_v27 = vsel %vm274_vm11, %v1209_v26, -inf  ;;  %v1232_v53 = vadd.f32 %v1231_v22, %v2354_v45 }
 0xd0b   :  { %1236 = vmax.xlane.f32.xlu0 %v1235_v27 }
 0xd0c   :  { %v1238_v55 = vsel %vm274_vm11, %v1232_v53, -inf }
 0xd0f   :  { %v1210_v28 = vpop.f32.mrf.mxu3 }
 0xd11   :  { %v1233_v29 = vpop.f32.mrf.mxu0 }
 0xd13   :  { %1145 = vrot.lane.b32.xlu2 %v2486_v63, %s2200_s26 }
 0xd3c   :  { %1125 = vmax.xlane.f32.xlu2 %v1124_v31 }
 0xd54   :  { %1166 = vrot.lane.b32.xlu2 %v2494_v4, %s2200_s26  ;;  %s1856_s26 = sshll.u32 %s2215_s5, 4  ;;  %s1857_s26 = int_to_ptr.vmem [resolvable:$true] %s1856_s26 }
 0xd5c   :  { %1379 = vrot.lane.b32.xlu2 %v2494_v4, %s2208_s1 }
 0xd6e   :  { %v1123_v32 = vpop.xlane.xlu2 %1122 }
 0xd6f   :  { %v1127_v34 = vsub.f32 %v1094_v19, %v1123_v32 }
 0xd71   :  { %v1129_v35 = vmul.f32 1.442695, %v1127_v34  ;;  %v1022_v34 = vld [vmem:[#allocation2 + $0x60] sm:$0xf] }
 0xd73   :  { %2109 = vpow2.f32 %v1129_v35  ;;  %v1341_v35 = vsel %vm347_vm12, %v1022_v34, 0 }
 0xd74   :  { %1350 = vmatpush.bf16.msrb.mxu0 %v1341_v35 }
 0xd76   :  { %v1146_v36 = vpop.permute.xlu2 %1145 }
 0xd77   :  { %v1151_v37 = vsel %vm347_vm12, %v1146_v36, 0 }
 0xd78   :  { %1160 = vmatpush.bf16.msrb.mxu1 %v1151_v37 }
 0xd79   :  { %v2110_v38 = vpop.eup %2109 }
 0xd7a   :  { %v1133_v41 = vsel %vm274_vm11, %v2110_v38, 0.0 }
 0xd7b   :  { %1134 = vadd.xlane.f32.xlu1 %v1133_v41 }
 0xd7e   :  { %v1237_v42 = vpop.xlane.xlu0 %1236 }
 0xd7f   :  { %v1241_v44 = vsub.f32 %v1209_v26, %v1237_v42 }
 0xd81   :  { %v1243_v46 = vmul.f32 1.442695, %v1241_v44 }
 0xd83   :  { %2111 = vpow2.f32 %v1243_v46 }
 0xd89   :  { %v2112_v47 = vpop.eup %2111 }
 0xd8a   :  { %v1247_v48 = vsel %vm274_vm11, %v2112_v47, 0.0 }
 0xd8b   :  { %1248 = vadd.xlane.f32.xlu0 %v1247_v48 }
 0xd94   :  { %1259 = vrot.lane.b32.xlu1 %v2486_v63, %s2209_s11 }
 0xd9c   :  { %1356 = vrot.lane.b32.xlu1 %v2486_v63, %s2208_s1 }
 0xd9f   :  { %1358 = vrot.lane.b32.xlu0 %v2486_v63, %s2210_s12 }
 0xdaf   :  { %v1126_v40 = vpop.xlane.xlu2 %1125 }
 0xdb0   :  { %v1128_v49 = vsub.f32 %v1118_v30, %v1126_v40 }
 0xdb2   :  { %v1131_v43 = vmul.f32 1.442695, %v1128_v49 }
 0xdb4   :  { %2113 = vpow2.f32 %v1131_v43 }
 0xdb7   :  { %v1167_v50 = vpop.permute.xlu2 %1166 }
 0xdb8   :  { %v1172_v51 = vsel %vm347_vm12, %v1167_v50, 0 }
 0xdb9   :  { %1181 = vmatpush.bf16.msrb.mxu2 %v1172_v51 }
 0xdba   :  { %v2114_v52 = vpop.eup %2113 }
 0xdbb   :  { %v1136_v54 = vsel %vm274_vm11, %v2114_v52, 0.0 }
 0xdc6   :  { %1137 = vadd.xlane.f32.xlu1 %v1136_v54 }
 0xdc9   :  { %1239 = vmax.xlane.f32.xlu0 %v1238_v55 }
 0xddf   :  { %1280 = vrot.lane.b32.xlu1 %v2494_v4, %s2209_s11 }
 0xde7   :  { %1426 = vrot.lane.b32.xlu1 %v2486_v63, %s2211_s13 }
 0xdee   :  { %v1135_v56 = vpop.xlane.xlu1 %1134 }
 0xdef   :  { %2115 = vrcp.f32 %v1135_v56  ;;  %1522 = vrot.lane.b32.xlu1 %v2494_v4, %s2212_s14  ;;  %v1380_v56 = vpop.permute.xlu2 %1379 }
 0xdf5   :  { %v2116_v58 = vpop.eup %2115 }
 0xdf6   :  { %v1141_v60 = vmul.f32 %v2116_v58, %v2110_v38 }
 0xdf7   :  { %1499 = vrot.lane.b32.xlu1 %v2486_v63, %s2212_s14 }
 0xdf8   :  { %v1143_v9 = vpack.c.bf16 %v1141_v60, %v1141_v60 }
 0xdfa   :  { %1971 = vmatmul.msk.bf16.vlgmr.msrb.gmra.mxu1 %vm274_vm11, %v1143_v9 }
 0xdfe   :  { %v1249_v61 = vpop.xlane.xlu0 %1248 }
 0xdff   :  { %2117 = vrcp.f32 %v1249_v61  ;;  %1520 = vrot.lane.b32.xlu1 %v2494_v4, %s2213_s15 }
 0xe05   :  { %v2118_v11 = vpop.eup %2117 }
 0xe06   :  { %v1255_v62 = vmul.f32 %v2118_v11, %v2112_v47  ;;  %v1260_v0 = vpop.permute.xlu1 %1259 }
 0xe07   :  { %v1265_v1 = vsel %vm347_vm12, %v1260_v0, 0 }
 0xe08   :  { %v1257_v2 = vpack.c.bf16 %v1255_v62, %v1255_v62  ;;  %1274 = vmatpush.bf16.msra.mxu1 %v1265_v1 }
 0xe0b   :  { %1975 = vmatmul.msk.bf16.vlgmr.msra.gmra.mxu1 %vm274_vm11, %v1257_v2 }
 0xe0e   :  { %v1357_v6 = vpop.permute.xlu1 %1356 }
 0xe11   :  { %v1359_v3 = vpop.permute.xlu0 %1358 }
 0xe12   :  { %v1364_v5 = vsel %vm274_vm11, %v1359_v3, 0 }
 0xe13   :  { %1373 = vmatpush.bf16.xpose.msrb.mxu1 %v1364_v5 }
 0xe1b   :  { %1979 = vmatmul.msk.bf16.vlgmr.msrb.gmra.mxu1 %vm274_vm11, %v1357_v6 }
 0xe39   :  { %v1138_v17 = vpop.xlane.xlu1 %1137 }
 0xe3a   :  { %2119 = vrcp.f32 %v1138_v17 }
 0xe3c   :  { %v1240_v12 = vpop.xlane.xlu0 %1239 }
 0xe3d   :  { %v1242_v13 = vsub.f32 %v1232_v53, %v1240_v12 }
 0xe3f   :  { %v1245_v14 = vmul.f32 1.442695, %v1242_v13 }
 0xe40   :  { %v2120_v15 = vpop.eup %2119 }
 0xe41   :  { %v1142_v16 = vmul.f32 %v2120_v15, %v2114_v52  ;;  %2121 = vpow2.f32 %v1245_v14 }
 0xe43   :  { %v1144_v18 = vpack.c.bf16 %v1142_v16, %v1142_v16 }
 0xe45   :  { %1972 = vmatmul.msk.bf16.vlgmr.msrb.gmra.mxu2 %vm274_vm11, %v1144_v18 }
 0xe47   :  { %v2122_v19 = vpop.eup %2121 }
 0xe48   :  { %v1250_v20 = vsel %vm274_vm11, %v2122_v19, 0.0 }
 0xe49   :  { %1251 = vadd.xlane.f32.xlu0 %v1250_v20 }
 0xe51   :  { %v1281_v21 = vpop.permute.xlu1 %1280 }
 0xe52   :  { %v1286_v23 = vsel %vm347_vm12, %v1281_v21, 0 }
 0xe53   :  { %1295 = vmatpush.bf16.msra.mxu2 %v1286_v23 }
 0xe59   :  { %v1427_v24 = vpop.permute.xlu1 %1426 }
 0xe5a   :  { %v1432_v25 = vsel %vm347_vm12, %v1427_v24, 0 }
 0xe5b   :  { %1441 = vmatpush.bf16.msrb.mxu3 %v1432_v25 }
 0xe5d   :  { %1381 = vrot.lane.b32.xlu0 %v2494_v4, %s2210_s12 }
 0xe61   :  { %v1523_v38 = vpop.permute.xlu1 %1522 }
 0xe62   :  { %v1528_v13 = vsel %vm274_vm11, %v1523_v38, 0 }
 0xe69   :  { %v1500_v50 = vpop.permute.xlu1 %1499 }
 0xe6a   :  { %v1505_v55 = vsel %vm274_vm11, %v1500_v50, 0 }
 0xe77   :  { %v1162_v26 = vpop.f32.mrf.mxu1 }
 0xe78   :  { %v1187_v46 = vpack.c.bf16 %v1162_v26, %v1162_v26 }
 0xe7a   :  { %v1332_v40 = vunpack.c.l.b16 %v1187_v46 }
 0xe7f   :  { %v1164_v22 = vpop.f32.mrf.mxu1 }
 0xe80   :  { %v1521_v22 = vpop.permute.xlu1 %1520 }
 0xe88   :  { %v1276_v27 = vpop.f32.mrf.mxu1 }
 0xe89   :  { %v1301_v1 = vpack.c.bf16 %v1276_v27, %v1276_v27 }
 0xe8b   :  { %v1305_v6 = vunpack.c.l.b16 %v1301_v1 }
 0xe90   :  { %v1278_v28 = vpop.f32.mrf.mxu1 }
 0xe98   :  { %v1375_v29 = vpop.f32.mrf.mxu1 }
 0xe99   :  { %v1376_v30 = vadd.f32 %v1375_v29, %v2350_v39 }
 0xe9b   :  { %v1402_v31 = vsel %vm274_vm11, %v1376_v30, -inf }
 0xe9c   :  { %1403 = vmax.xlane.f32.xlu2 %v1402_v31 }
 0xea0   :  { %v1377_v32 = vpop.f32.mrf.mxu1 }
 0xeb4   :  { %1497 = vrot.lane.b32.xlu2 %v2486_v63, %s2213_s15 }
 0xebc   :  { %v1252_v36 = vpop.xlane.xlu0 %1251 }
 0xebd   :  { %2123 = vrcp.f32 %v1252_v36 }
 0xec3   :  { %v2124_v37 = vpop.eup %2123 }
 0xec4   :  { %v1256_v41 = vmul.f32 %v2124_v37, %v2122_v19 }
 0xec6   :  { %v1258_v42 = vpack.c.bf16 %v1256_v41, %v1256_v41 }
 0xec8   :  { %v1183_v44 = vpop.f32.mrf.mxu2  ;;  %1976 = vmatmul.msk.bf16.vlgmr.msra.gmra.mxu2 %vm274_vm11, %v1258_v42 }
 0xec9   :  { %v1188_v47 = vpack.c.bf16 %v1183_v44, %v1183_v44 }
 0xecb   :  { %v1333_v48 = vunpack.c.l.b16 %v1188_v47 }
 0xecd   :  { %v1334_v49 = vrot.slane %v1333_v48, 7 }
 0xecf   :  { %v1335_v43 = vsel %vm1308_vm13, %v1334_v49, %v1332_v40  ;;  %v1382_v51 = vpop.permute.xlu0 %1381 }
 0xed0   :  { %v1336_v52 = vpack.c.b16 %v1335_v43, %v1335_v43  ;;  %v1387_v53 = vsel %vm274_vm11, %v1382_v51, 0  ;;  %v1185_v54 = vpop.f32.mrf.mxu2 }
 0xed1   :  { %1396 = vmatpush.bf16.xpose.msrb.mxu2 %v1387_v53 }
 0xed2   :  { %1978 = vmatmul.msk.bf16.vlgmr.msrb.gmra.mxu0 %vm274_vm11, %v1336_v52 }
 0xed8   :  { %1980 = vmatmul.msk.bf16.vlgmr.msrb.gmra.mxu2 %vm274_vm11, %v1380_v56 }
 0xed9   :  { %1514 = vmatpush.bf16.xpose.msra.mxu2 %v1505_v55 }
 0xf0f   :  { %v1404_v58 = vpop.xlane.xlu2 %1403 }
 0xf10   :  { %v1408_v60 = vsub.f32 %v1376_v30, %v1404_v58 }
 0xf12   :  { %v1410_v9 = vmul.f32 1.442695, %v1408_v60 }
 0xf14   :  { %2125 = vpow2.f32 %v1410_v9 }
 0xf17   :  { %v1498_v61 = vpop.permute.xlu2 %1497 }
 0xf18   :  { %1984 = vmatmul.msk.bf16.vlgmr.msra.gmra.mxu2 %vm274_vm11, %v1498_v61  ;;  %v1024_v61 = vld [vmem:[#allocation2 + $0x68] sm:$0xf] }
 0xf1a   :  { %v2126_v11 = vpop.eup %2125 }
 0xf1b   :  { %v1414_v62 = vsel %vm274_vm11, %v2126_v11, 0.0 }
 0xf1c   :  { %1415 = vadd.xlane.f32.xlu0 %v1414_v62 }
 0xf4b   :  { %v1297_v0 = vpop.f32.mrf.mxu2 }
 0xf4c   :  { %v1302_v2 = vpack.c.bf16 %v1297_v0, %v1297_v0 }
 0xf4e   :  { %v1306_v3 = vunpack.c.l.b16 %v1302_v2 }
 0xf4f   :  { %v2570_v5 = vpop.f32.mrf.mxu0 }
 0xf50   :  { %v1307_v7 = vrot.slane %v1306_v3, 7 }
 0xf52   :  { %v1309_v17 = vsel %vm1308_vm13, %v1307_v7, %v1305_v6 }
 0xf53   :  { %v1310_v10 = vpack.c.b16 %v1309_v17, %v1309_v17  ;;  %v1299_v12 = vpop.f32.mrf.mxu2 }
 0xf55   :  { %1977 = vmatmul.msk.bf16.vlgmr.msra.gmra.mxu3 %vm274_vm11, %v1310_v10 }
 0xf56   :  { %1537 = vmatpush.bf16.xpose.msra.mxu3 %v1528_v13 }
 0xf57   :  { %v1354_v14 = vpop.f32.mrf.mxu0 }
 0xf5b   :  { %v1398_v15 = vpop.f32.mrf.mxu2 }
 0xf5c   :  { %v1399_v16 = vadd.f32 %v1398_v15, %v2354_v45 }
 0xf5e   :  { %v1405_v18 = vsel %vm274_vm11, %v1399_v16, -inf }
 0xf5f   :  { %1406 = vmax.xlane.f32.xlu1 %v1405_v18 }
 0xf63   :  { %v1400_v19 = vpop.f32.mrf.mxu2 }
 0xf8f   :  { %v1416_v20 = vpop.xlane.xlu0 %1415 }
 0xf90   :  { %2127 = vrcp.f32 %v1416_v20 }
 0xf96   :  { %v2128_v21 = vpop.eup %2127 }
 0xf97   :  { %v1422_v23 = vmul.f32 %v2128_v21, %v2126_v11  ;;  %v1481_v11 = vsel %vm347_vm12, %v1024_v61, 0 }
 0xf98   :  { %1490 = vmatpush.bf16.msra.mxu1 %v1481_v11 }
 0xf99   :  { %v1424_v24 = vpack.c.bf16 %v1422_v23, %v1422_v23 }
 0xf9b   :  { %1981 = vmatmul.msk.bf16.vlgmr.msrb.gmra.mxu3 %vm274_vm11, %v1424_v24  ;;  %v1516_v25 = vpop.f32.mrf.mxu2 }
 0xf9c   :  { %v1517_v35 = vadd.f32 %v1516_v25, %v2350_v39 }
 0xf9e   :  { %v1543_v36 = vsel %vm274_vm11, %v1517_v35, -inf }
 0xfa3   :  { %v1518_v26 = vpop.f32.mrf.mxu2 }
 0xfab   :  { %1985 = vmatmul.msk.bf16.vlgmr.msra.gmra.mxu3 %vm274_vm11, %v1521_v22 }
 0xfd2   :  { %v1407_v27 = vpop.xlane.xlu1 %1406 }
 0xfd3   :  { %v1409_v28 = vsub.f32 %v1399_v16, %v1407_v27 }
 0xfd5   :  { %v1412_v29 = vmul.f32 1.442695, %v1409_v28  ;;  %v1025_v28 = vld [vmem:[#allocation2 + $0x6c] sm:$0xf] }
 0xfd7   :  { %2129 = vpow2.f32 %v1412_v29  ;;  %v1622_v29 = vsel %vm347_vm12, %v1025_v28, 0 }
 0xfd8   :  { %v2579_v30 = vpop.f32.mrf.mxu3  ;;  %1631 = vmatpush.bf16.msrb.mxu2 %v1622_v29  ;;  %v2038_v29 = vld [vmem:[#allocation2 + $0x98] sm:$0xff] }
 0xfd9   :  { %v1353_v23 = vadd.f32 %v2570_v5, %v2579_v30 }
 0xfdd   :  { %v2130_v31 = vpop.eup %2129 }
 0xfde   :  { %v1417_v32 = vsel %vm274_vm11, %v2130_v31, 0.0 }
 0xfdf   :  { %1418 = vadd.xlane.f32.xlu0 %v1417_v32 }
 0xfe0   :  { %v1328_v34 = vpop.f32.mrf.mxu3 }
 0xff3   :  { %1447 = vrot.lane.b32.xlu0 %v2494_v4, %s2211_s13 }
0x101d   :  { %1544 = vmax.xlane.f32.xlu0 %v1543_v36 }
0x101e   :  { %v1443_v37 = vpop.f32.mrf.mxu3 }
0x101f   :  { %v1468_v0 = vpack.c.bf16 %v1443_v37, %v1443_v37 }
0x1021   :  { %v1472_v3 = vunpack.c.l.b16 %v1468_v0 }
0x1026   :  { %v1445_v38 = vpop.f32.mrf.mxu3 }
0x102e   :  { %v1539_v41 = vpop.f32.mrf.mxu3 }
0x102f   :  { %v1540_v42 = vadd.f32 %v1539_v41, %v2354_v45 }
0x1031   :  { %v1546_v44 = vsel %vm274_vm11, %v1540_v42, -inf }
0x1032   :  { %1547 = vmax.xlane.f32.xlu2 %v1546_v44 }
0x1036   :  { %v1541_v46 = vpop.f32.mrf.mxu3 }
0x104a   :  { %1567 = vrot.lane.b32.xlu2 %v2486_v63, %s2214_s16 }
0x1052   :  { %v1419_v47 = vpop.xlane.xlu0 %1418 }
0x1053   :  { %2131 = vrcp.f32 %v1419_v47  ;;  %v1644_v47 = vperm.slane %v2483_v59, 1 }
0x1059   :  { %v2132_v48 = vpop.eup %2131 }
0x105a   :  { %v1423_v40 = vmul.f32 %v2132_v48, %v2130_v31 }
0x105c   :  { %v1425_v50 = vpack.c.bf16 %v1423_v40, %v1423_v40 }
0x1065   :  { %v1448_v39 = vpop.permute.xlu0 %1447 }
0x1066   :  { %v1453_v49 = vsel %vm347_vm12, %v1448_v39, 0 }
0x1067   :  { %1462 = vmatpush.bf16.msra.mxu0 %v1453_v49 }
0x106a   :  { %1982 = vmatmul.msk.bf16.vlgmr.msra.gmra.mxu0 %vm274_vm11, %v1425_v50 }
0x1090   :  { %v1545_v43 = vpop.xlane.xlu0 %1544 }
0x1091   :  { %v1549_v45 = vsub.f32 %v1517_v35, %v1545_v43 }
0x1093   :  { %v1551_v51 = vmul.f32 1.442695, %v1549_v45 }
0x1095   :  { %2133 = vpow2.f32 %v1551_v51 }
0x109b   :  { %v2134_v52 = vpop.eup %2133 }
0x109c   :  { %v1555_v53 = vsel %vm274_vm11, %v2134_v52, 0.0 }
0x109d   :  { %1556 = vadd.xlane.f32.xlu1 %v1555_v53 }
0x10a5   :  { %v1548_v63 = vpop.xlane.xlu2 %1547 }
0x10a6   :  { %v1550_v54 = vsub.f32 %v1540_v42, %v1548_v63 }
0x10a8   :  { %v1553_v55 = vmul.f32 1.442695, %v1550_v54 }
0x10aa   :  { %2135 = vpow2.f32 %v1553_v55  ;;  %v2034_v55 = vld [vmem:[#allocation2 + $0x78] sm:$0xff] }
0x10ab   :  { %1730 = vmatpush.bf16.msrb.mxu3 %v2034_v55 }
0x10ad   :  { %v1568_v56 = vpop.permute.xlu2 %1567 }
0x10ae   :  { %v1573_v58 = vsel %vm347_vm12, %v1568_v56, 0 }
0x10af   :  { %1582 = vmatpush.bf16.msrb.mxu0 %v1573_v58 }
0x10b0   :  { %v2136_v60 = vpop.eup %2135 }
0x10b1   :  { %v1558_v9 = vsel %vm274_vm11, %v2136_v60, 0.0 }
0x10b2   :  { %1559 = vadd.xlane.f32.xlu1 %v1558_v9  ;;  %v2033_v9 = vld [vmem:[#allocation2 + $0x70] sm:$0xff] }
0x10b3   :  { %1731 = vmatpush.bf16.msrb.mxu3 %v2033_v9  ;;  %1779 = vmatpush.bf16.msra.mxu0 %v2038_v29 }
0x10cb   :  { %1588 = vrot.lane.b32.xlu1 %v2494_v4, %s2214_s16 }
0x10e7   :  { %v1464_v62 = vpop.f32.mrf.mxu0 }
0x10e8   :  { %v1469_v1 = vpack.c.bf16 %v1464_v62, %v1464_v62 }
0x10ea   :  { %v1473_v2 = vunpack.c.l.b16 %v1469_v1 }
0x10ec   :  { %v1474_v6 = vrot.slane %v1473_v2, 7 }
0x10ee   :  { %v1475_v7 = vsel %vm1308_vm13, %v1474_v6, %v1472_v3 }
0x10ef   :  { %v1476_v17 = vpack.c.b16 %v1475_v7, %v1475_v7  ;;  %v1466_v10 = vpop.f32.mrf.mxu0 }
0x10f0   :  { %v1693_v10 = vperm.slane %v2483_v59, 2 }
0x10f1   :  { %1983 = vmatmul.msk.bf16.vlgmr.msra.gmra.mxu1 %vm274_vm11, %v1476_v17 }
0x1110   :  { %v1557_v12 = vpop.xlane.xlu1 %1556 }
0x1111   :  { %2137 = vrcp.f32 %v1557_v12 }
0x1117   :  { %v2138_v13 = vpop.eup %2137 }
0x1118   :  { %v1563_v4 = vmul.f32 %v2138_v13, %v2134_v52 }
0x111a   :  { %v1565_v14 = vpack.c.bf16 %v1563_v4, %v1563_v4  ;;  %v1696_v4 = vperm.slane %v2483_v59, 3 }
0x111c   :  { %1986 = vmatmul.msk.bf16.vlgmr.msrb.gmra.mxu0 %vm274_vm11, %v1565_v14 }
0x1125   :  { %v1560_v15 = vpop.xlane.xlu1 %1559 }
0x1126   :  { %2139 = vrcp.f32 %v1560_v15 }
0x112c   :  { %v2140_v16 = vpop.eup %2139 }
0x112d   :  { %v1564_v18 = vmul.f32 %v2140_v16, %v2136_v60 }
0x112f   :  { %v1566_v21 = vpack.c.bf16 %v1564_v18, %v1564_v18 }
0x113d   :  { %v1589_v19 = vpop.permute.xlu1 %1588 }
0x113e   :  { %v1594_v20 = vsel %vm347_vm12, %v1589_v19, 0  ;;  %vm1652_vm12 = vcmask 254976  }
0x113f   :  { %1603 = vmatpush.bf16.msrb.mxu1 %v1594_v20 }
0x1142   :  { %1987 = vmatmul.msk.bf16.vlgmr.msrb.gmra.mxu1 %vm274_vm11, %v1566_v21 }
0x116e   :  { %v1492_v24 = vpop.f32.mrf.mxu1 }
0x116f   :  { %v1496_v25 = vadd.f32 %v1492_v24, %v1353_v23 }
0x1176   :  { %v1494_v26 = vpop.f32.mrf.mxu1 }
0x1199   :  { %v1584_v22 = vpop.f32.mrf.mxu0 }
0x119a   :  { %v1609_v32 = vpack.c.bf16 %v1584_v22, %v1584_v22 }
0x119c   :  { %v1613_v36 = vunpack.c.l.b16 %v1609_v32  ;;  %v2036_v32 = vld [vmem:[#allocation2 + $0x88] sm:$0xff] }
0x11a1   :  { %v1586_v27 = vpop.f32.mrf.mxu0 }
0x11bf   :  { %v1605_v31 = vpop.f32.mrf.mxu1 }
0x11c0   :  { %v1610_v34 = vpack.c.bf16 %v1605_v31, %v1605_v31  ;;  %v2037_v31 = vld [vmem:[#allocation2 + $0x90] sm:$0xff] }
0x11c1   :  { %1780 = vmatpush.bf16.msra.mxu0 %v2037_v31 }
0x11c2   :  { %v1614_v35 = vunpack.c.l.b16 %v1610_v34  ;;  %v2035_v34 = vld [vmem:[#allocation2 + $0x80] sm:$0xff] }
0x11c4   :  { %v1615_v37 = vrot.slane %v1614_v35, 7  ;;  %v1701_v35 = vperm.slane %v2483_v59, 4 }
0x11c5   :  { %1781 = vmatpush.bf16.msra.mxu0 %v2036_v32 }
0x11c6   :  { %v1616_v38 = vsel %vm1308_vm13, %v1615_v37, %v1613_v36 }
0x11c7   :  { %v1617_v41 = vpack.c.b16 %v1616_v38, %v1616_v38  ;;  %v1607_v42 = vpop.f32.mrf.mxu1 }
0x11c9   :  { %1988 = vmatmul.msk.bf16.vlgmr.msrb.gmra.mxu2 %vm274_vm11, %v1617_v41  ;;  %1782 = vmatpush.bf16.msra.mxu0 %v2035_v34 }
0x124c   :  { %v1633_v5 = vpop.f32.mrf.mxu2 }
0x124d   :  { %v1637_v30 = vadd.f32 %v1633_v5, %v1496_v25 }
0x124f   :  { %v1639_v44 = vrot.slane %v1637_v30, 1  ;;  %v1642_v46 = vadd.f32 %v1637_v30, %v2473_v8 }
0x1251   :  { %v1643_v48 = vadd.f32 %v1639_v44, %v2475_v57  ;;  %v1645_v40 = vadd.f32 %v1644_v47, %v1642_v46 }
0x1253   :  { %v1646_v39 = vadd.f32 %v1644_v47, %v1643_v48  ;;  %v1657_v51 = vmul.f32 %v1645_v40, %v1645_v40 }
0x1254   :  { %v1635_v49 = vpop.f32.mrf.mxu2 }
0x1255   :  { %v1649_v50 = vrot.slane %v1646_v39, 7  ;;  %v1658_v43 = vmul.f32 %v1646_v39, %v1646_v39  ;;  %v1747_v49 = vperm.slane %v2483_v59, 5 }
0x1257   :  { %v1650_v45 = vsel %vm1308_vm13, %v1649_v50, %v1645_v40  ;;  %v1661_v52 = vrot.slane %v1658_v43, 7 }
0x1258   :  { %v1653_v53 = vsel %vm1652_vm12, %v1650_v45, 0.0 }
0x1259   :  { %1654 = vadd.xlane.f32.xlu0 %v1653_v53  ;;  %v1662_v63 = vsel %vm1308_vm13, %v1661_v52, %v1657_v51 }
0x125a   :  { %v1664_v8 = vsel %vm1652_vm12, %v1662_v63, 0.0 }
0x125b   :  { %1665 = vadd.xlane.f32.xlu1 %v1664_v8 }
0x12cc   :  { %v1655_v54 = vpop.xlane.xlu0 %1654 }
0x12cd   :  { %v1656_v57 = vmul.f32 %v1655_v54, %v2293_v33 }
0x12ce   :  { %v1666_v56 = vpop.xlane.xlu1 %1665 }
0x12cf   :  { %v1667_v58 = vmul.f32 %v1666_v56, %v2293_v33  ;;  %v1668_v60 = vmul.f32 %v1656_v57, %v1656_v57  ;;  %v1671_v6 = vrot.slane %v1656_v57, 1  ;;  %v1674_v17 = vsub.f32 %v1645_v40, %v1656_v57 }
0x12d1   :  { %v1669_v61 = vsub.f32 %v1667_v58, %v1668_v60  ;;  %v1675_v13 = vsub.f32 %v1646_v39, %v1671_v6 }
0x12d3   :  { %v1676_v11 = vadd.f32 1e-12, %v1669_v61 }
0x12d5   :  { %2141 = vrsqrt.f32 %v1676_v11  ;;  %vm1683_vm14 = vweird.f32 %v1676_v11 }
0x12db   :  { %v2142_v62 = vpop.eup %2141 }
0x12dc   :  { %v1678_v0 = vmul.f32 %v2142_v62, %v1676_v11  ;;  %vm1684_vm11 = vweird.f32 %v2142_v62 }
0x12dd   :  { %vm1685_vm15 = vmor %vm1683_vm14, %vm1684_vm11 }
0x12de   :  { %v1679_v1 = vmul.f32 %v2142_v62, %v1678_v0 }
0x12e0   :  { %v1680_v2 = vmul.f32 0.5, %v1679_v1 }
0x12e2   :  { %v1681_v3 = vsub.f32 1.5, %v1680_v2 }
0x12e4   :  { %v1682_v7 = vmul.f32 %v2142_v62, %v1681_v3 }
0x12e6   :  { %v1686_v12 = vsel %vm1685_vm15, %v2142_v62, %v1682_v7 }
0x12e7   :  { %v1688_v14 = vrot.slane %v1686_v12, 1  ;;  %v1691_v15 = vmul.f32 %v1686_v12, %v1674_v17 }
0x12e9   :  { %v1692_v16 = vmul.f32 %v1688_v14, %v1675_v13  ;;  %v1694_v18 = vmul.f32 %v1693_v10, %v1691_v15 }
0x12eb   :  { %v1695_v19 = vmul.f32 %v1693_v10, %v1692_v16  ;;  %v1697_v20 = vadd.f32 %v1696_v4, %v1694_v18 }
0x12ed   :  { %v1698_v21 = vadd.f32 %v1696_v4, %v1695_v19  ;;  %v1699_v23 = vpack.c.bf16 %v1697_v20, %v1697_v20 }
0x12ef   :  { %v1700_v24 = vpack.c.bf16 %v1698_v21, %v1698_v21  ;;  %v1704_v26 = vunpack.c.l.b16 %v1699_v23  ;;  %v1842_v23 = vperm.slane %v2483_v59, 7 }
0x12f1   :  { %v1705_v25 = vunpack.c.l.b16 %v1700_v24 }
0x12f3   :  { %v1706_v22 = vrot.slane %v1705_v25, 7 }
0x12f5   :  { %v1707_v27 = vsel %vm1308_vm13, %v1706_v22, %v1704_v26 }
0x12f6   :  { %v1708_v28 = vpack.c.b16 %v1707_v27, %v1707_v27 }
0x12f8   :  { %1997 = vmatmul.msk.bf16.vlgmr.msrb.gmra.mxu3 %vm141_vm3, %v1708_v28 }
0x137b   :  { %v1733_v36 = vpop.f32.mrf.mxu3 }
0x137c   :  { %v1734_v37 = vadd.f32 %v1733_v36, %v1701_v35 }
0x137e   :  { %v1737_v38 = vmul.f32 %v1734_v37, %v1734_v37 }
0x1380   :  { %v1738_v41 = vmul.f32 %v1737_v38, %v1734_v37 }
0x1382   :  { %v1739_v42 = vmul.f32 0.044715, %v1738_v41 }
0x1383   :  { %v1735_v5 = vpop.f32.mrf.mxu3 }
0x1384   :  { %v1740_v30 = vadd.f32 %v1739_v42, %v1734_v37 }
0x1386   :  { %v1741_v44 = vmul.f32 0.7978846, %v1740_v30 }
0x1388   :  { %2143 = vtanh.f32 %v1741_v44 }
0x138e   :  { %v2144_v46 = vpop.eup %2143 }
0x138f   :  { %v1743_v47 = vadd.f32 1.0, %v2144_v46 }
0x1391   :  { %v1744_v48 = vmul.f32 0.5, %v1743_v47 }
0x1393   :  { %v1745_v40 = vmul.f32 %v1744_v48, %v1734_v37 }
0x1395   :  { %v1746_v39 = vpack.c.bf16 %v1745_v40, %v1745_v40 }
0x1397   :  { %2014 = vmatmul.msk.bf16.vlgmr.msra.gmra.mxu0 %vm943_vm4, %v1746_v39 }
0x1414   :  { %v1784_v50 = vpop.f32.mrf.mxu0 }
0x1415   :  { %v1785_v43 = vadd.f32 %v1784_v50, %v1747_v49 }
0x1417   :  { %v1789_v45 = vrot.slane %v1785_v43, 1  ;;  %v1792_v51 = vadd.f32 %v1785_v43, %v1697_v20 }
0x1419   :  { %v1793_v52 = vadd.f32 %v1789_v45, %v1698_v21  ;;  %v1803_v57 = vmul.f32 %v1792_v51, %v1792_v51 }
0x141b   :  { %v1796_v53 = vrot.slane %v1793_v52, 7  ;;  %v1804_v63 = vmul.f32 %v1793_v52, %v1793_v52 }
0x141c   :  { %v1786_v8 = vpop.f32.mrf.mxu0 }
0x141d   :  { %v1797_v54 = vsel %vm1308_vm13, %v1796_v53, %v1792_v51  ;;  %v1807_v55 = vrot.slane %v1804_v63, 7 }
0x141e   :  { %v1799_v56 = vsel %vm1652_vm12, %v1797_v54, 0.0 }
0x141f   :  { %1800 = vadd.xlane.f32.xlu0 %v1799_v56  ;;  %v1808_v58 = vsel %vm1308_vm13, %v1807_v55, %v1803_v57 }
0x1420   :  { %v1810_v60 = vsel %vm1652_vm12, %v1808_v58, 0.0 }
0x1421   :  { %1811 = vadd.xlane.f32.xlu2 %v1810_v60 }
0x1492   :  { %v1801_v9 = vpop.xlane.xlu0 %1800 }
0x1493   :  { %v1802_v61 = vmul.f32 %v1801_v9, %v2293_v33 }
0x1494   :  { %v1812_v11 = vpop.xlane.xlu2 %1811 }
0x1495   :  { %v1813_v62 = vmul.f32 %v1812_v11, %v2293_v33  ;;  %v1814_v0 = vmul.f32 %v1802_v61, %v1802_v61  ;;  %v1817_v12 = vrot.slane %v1802_v61, 1  ;;  %v1820_v4 = vsub.f32 %v1792_v51, %v1802_v61 }
0x1496   :  { %v1839_v33 = vperm.slane %v2483_v59, 6 }
0x1497   :  { %v1815_v1 = vsub.f32 %v1813_v62, %v1814_v0  ;;  %v1821_v15 = vsub.f32 %v1793_v52, %v1817_v12 }
0x1499   :  { %v1822_v2 = vadd.f32 1e-12, %v1815_v1 }
0x149b   :  { %2145 = vrsqrt.f32 %v1822_v2  ;;  %vm1829_vm0 = vweird.f32 %v1822_v2 }
0x14a1   :  { %v2146_v3 = vpop.eup %2145 }
0x14a2   :  { %v1824_v6 = vmul.f32 %v2146_v3, %v1822_v2  ;;  %vm1830_vm3 = vweird.f32 %v2146_v3 }
0x14a3   :  { %vm1831_vm1 = vmor %vm1829_vm0, %vm1830_vm3 }
0x14a4   :  { %v1825_v7 = vmul.f32 %v2146_v3, %v1824_v6 }
0x14a6   :  { %v1826_v17 = vmul.f32 0.5, %v1825_v7 }
0x14a8   :  { %v1827_v10 = vsub.f32 1.5, %v1826_v17 }
0x14aa   :  { %v1828_v13 = vmul.f32 %v2146_v3, %v1827_v10 }
0x14ac   :  { %v1832_v14 = vsel %vm1831_vm1, %v2146_v3, %v1828_v13 }
0x14ad   :  { %v1834_v16 = vrot.slane %v1832_v14, 1  ;;  %v1837_v18 = vmul.f32 %v1832_v14, %v1820_v4 }
0x14af   :  { %v1838_v19 = vmul.f32 %v1834_v16, %v1821_v15  ;;  %v1840_v20 = vmul.f32 %v1839_v33, %v1837_v18 }
0x14b1   :  { %v1841_v21 = vmul.f32 %v1839_v33, %v1838_v19  ;;  %v1843_v25 = vadd.f32 %v1842_v23, %v1840_v20 }
0x14b3   :  { %v1844_v24 = vadd.f32 %v1842_v23, %v1841_v21 }
0x14b5   :  { %v1847_v26 = vrot.slane %v1844_v24, 7 }
0x14b7   :  { %v1848_v22 = vsel %vm1308_vm13, %v1847_v26, %v1843_v25 }
0x14b8   :  { %1850 = vst.msk [vmem:[#allocation5] sm:$0x3] %vm1652_vm12, %v1848_v22 }
0x14b9   :  { %1861 = dma.vmem_to_hbm [thread:$0]  %s1857_s26, 32, %s1859_s20, [#allocation4]  }
0x14ba   :  { %2197 = dma.done.wait [#allocation4], 32  }
0x14bb   :  { %2198 = vsyncadd [#allocation4], 4294967264 }
0x14bc   :  { %1866 = vsyncpa [#allocation3], 1 }
0x14bd   :  { %1867 = vsyncpa [#allocation4], 1 }

</bundles_post_ra>
